<compile_context>
chip_gen: v7x
topology: tpu7x:2x2x1
jax: 0.10.0
libtpu: 0.0.40
codegen_flags: <defaults>
</compile_context>

<pallas_src>
import jax
import jax.numpy as jnp
from jax.experimental import pallas as pl
from jax.experimental.pallas import tpu as pltpu

MXU_BF16 = True  # bf16 MXU operands (f32 accumulation) for the two large weights.


# ----------------------------------------------------------------------------
# Elementwise helpers (only ops that lower cleanly in Mosaic).
# ----------------------------------------------------------------------------
def _erf(x):
    # Abramowitz & Stegun 7.1.26 (|err| < 1.5e-7): only +,*,/,exp,abs,where.
    a1, a2, a3, a4, a5 = (0.254829592, -0.284496736, 1.421413741,
                          -1.453152027, 1.061405429)
    p = 0.3275911
    s = jnp.where(x >= 0.0, 1.0, -1.0)
    ax = jnp.abs(x)
    t = 1.0 / (1.0 + p * ax)
    poly = ((((a5 * t + a4) * t + a3) * t + a2) * t + a1) * t
    return s * (1.0 - poly * jnp.exp(-ax * ax))


def _gelu(x):
    # Exact-erf GELU kept for fidelity with nn.GELU(approximate='none');
    # (tanh-approx would shift VALU work to the idle EUP but perturbs outputs).
    return 0.5 * x * (1.0 + _erf(x * 0.7071067811865476))


def _relu(x):
    return jnp.maximum(x, 0.0)


def _softplus(x):  # matches nn.Softplus (beta=1)
    return jnp.maximum(x, 0.0) + jnp.log(1.0 + jnp.exp(-jnp.abs(x)))


def _bn_act(x, gamma, beta, act):
    # Training-mode BatchNorm1d (biased batch stats, eps=1e-5), single pass:
    # var = E[x^2] - E[x]^2  (the two reductions can issue back-to-back).
    inv_n = 1.0 / x.shape[0]
    mean = jnp.sum(x, axis=0, keepdims=True) * inv_n
    meansq = jnp.sum(x * x, axis=0, keepdims=True) * inv_n
    var = meansq - mean * mean
    return act((x - mean) * jax.lax.rsqrt(var + 1e-5) * gamma + beta)


# ----------------------------------------------------------------------------
# The single fused kernel.
# ----------------------------------------------------------------------------
def _make_net_kernel(n_views, batch, num_classes, z_dim):
    V, N, C, Z = n_views, batch, num_classes, z_dim
    inv_v = 1.0 / float(V)

    def kernel(w0b0_ref, g0beta0_ref, w1_ref, whead_ref, vecs_ref, eps_ref,
               xcat_ref, wenc_ref, benc_ref, wzT_ref, wl_ref, convb_ref,
               lab_ref, z_ref, pred_ref):
        # ---------------- label path (Qc_inference_mlp) -------------------
        # Identity-embedding fast path: eye(C) @ W0 == W0 => Linear == W0 + b0.
        h = w0b0_ref[0:C, :] + w0b0_ref[C:C + 1, :]                       # (C, H)
        h = _bn_act(h, g0beta0_ref[0:1, :], g0beta0_ref[1:2, :], _gelu)
        h = jnp.dot(h.astype(w1_ref.dtype), w1_ref[...],
                    preferred_element_type=jnp.float32) + vecs_ref[0:1, :]
        h = _bn_act(h, vecs_ref[1:2, :], vecs_ref[2:3, :], _gelu)         # (C, Z)
        # Packed (z_loc | z_sca) head: one (C,Z)@(Z,2Z) matmul.
        hz = jnp.dot(h, whead_ref[...], preferred_element_type=jnp.float32)
        mu = hz[:, 0:Z] + vecs_ref[3:4, :]
        var = _softplus(hz[:, Z:2 * Z] + vecs_ref[4:5, :])
        # gaussian_reparameterization_var(mu, var, times=5), eps pre-averaged.
        lab = mu + jnp.sqrt(var + 1e-8) * eps_ref[...]                    # (C, Z)
        lab_ref[...] = lab

        # ---------------- sample path (stand-in encoders) -----------------
        # TODO(synk): the VAE/GAT encoders are undefined in the source; per-view
        # Linear stand-ins merged into one block-diagonal matmul.
        zc = jnp.dot(xcat_ref[...].astype(wenc_ref.dtype), wenc_ref[...],
                     preferred_element_type=jnp.float32) + benc_ref[...]  # (N, V*Z)
        z_views = [zc[:, i * Z:(i + 1) * Z] for i in range(V)]
        z_fused = z_views[0]
        for zv in z_views[1:]:
            z_fused = z_fused + zv
        z_fused = z_fused * inv_v

        # Shared BatchNorm1d + ReLU (training-mode stats, applied per group),
        # stored straight into the packed latent slab (no concat-then-slice).
        bn_g = vecs_ref[5:6, :]
        bn_b = vecs_ref[6:7, :]
        z_ref[0:N, :] = _bn_act(z_fused, bn_g, bn_b, _relu)
        for i in range(V):
            z_ref[(i + 1) * N:(i + 2) * N, :] = _bn_act(z_views[i], bn_g, bn_b,
                                                        _relu)

        # ---------------- grouped-conv classifier -------------------------
        # Conv1d(C, C, 2Z, groups=C) on concat(z, label) reduces exactly to:
        #   logits[n, c] = z[n]·Wz[:, c] + lab[c]·Wl[c] + b[c]
        # per-class label bias via a tiny ones-row MXU contraction (no diag mask).
        lab_bias = jax.lax.dot_general(
            jnp.ones((8, Z), jnp.float32), lab * wl_ref[...],
            dimension_numbers=(((1,), (1,)), ((), ())),
            preferred_element_type=jnp.float32)[0:1, :]                   # (1, C)
        z_all = z_ref[...]                                                # ((V+1)N, Z)
        logits = jnp.dot(z_all, wzT_ref[...],
                         preferred_element_type=jnp.float32)
        logits = logits + lab_bias + convb_ref[...]                       # ((V+1)N, C)

        # Stable sigmoid + binary entropy, matching the reference (+1e-5 logs).
        p = jnp.exp(-(jnp.maximum(-logits, 0.0)
                      + jnp.log(1.0 + jnp.exp(-jnp.abs(logits)))))
        loss = -(p * jnp.log(p + 1e-5) + (1.0 - p) * jnp.log(1.0 - p + 1e-5))
        pred_ref[0:(V + 1) * N, :] = p   # rows: [pred(z_sample); pred(view_i)...]

        # ---------------- entropy-weighted adaptive fusion ----------------
        eps = 1e-5
        preds = [p[v * N:(v + 1) * N, :] for v in range(V + 1)]
        losses = [loss[v * N:(v + 1) * N, :] for v in range(V + 1)]
        ws = [jnp.where(l > eps, 1.0 / (l + eps), jnp.zeros_like(l))
              for l in losses]
        wsum = ws[0]
        for w in ws[1:]:
            wsum = wsum + w
        inv = jnp.where(wsum != 0.0, 1.0 / wsum, jnp.zeros_like(wsum))
        pf = jnp.zeros_like(preds[0])
        for w, pv in zip(ws, preds):
            pf = pf + (w * inv) * pv
        pred_ref[(V + 1) * N:(V + 2) * N, :] = jnp.where(
            jnp.isnan(pf), jnp.zeros_like(pf), pf)

    return kernel


# ----------------------------------------------------------------------------
# Parameter construction (deterministic, PyTorch-default-style uniform init),
# packed to minimize per-call input DMAs.
# ----------------------------------------------------------------------------
def _init_linear(key, in_dim, out_dim):
    kw, kb = jax.random.split(key)
    bound = 1.0 / float(in_dim) ** 0.5
    w = jax.random.uniform(kw, (in_dim, out_dim), jnp.float32, -bound, bound)
    b = jax.random.uniform(kb, (1, out_dim), jnp.float32, -bound, bound)
    return w, b


def init_net_params(key, d_list, num_classes, z_dim, hidden=1024):
    C, Z, V, H = num_classes, z_dim, len(d_list), hidden
    ks = list(jax.random.split(key, 8 + V))
    mxu_dt = jnp.bfloat16 if MXU_BF16 else jnp.float32
    p = dict(num_classes=C, z_dim=Z, hidden=H, d_list=tuple(d_list))

    # label_embedding_u: learnable, identity-initialized -> enables fast path.
    p["label_embedding_u"] = jnp.eye(C, dtype=jnp.float32)
    p["label_embedding_is_identity"] = True

    # label_mlp = Qc_inference_mlp(C, Z, hidden_dim=[1024])
    w0, b0 = _init_linear(ks[0], C, H)
    p["w0b0"] = jnp.concatenate([w0, b0], axis=0)                    # (C+1, H)
    p["g0beta0"] = jnp.concatenate([jnp.ones((1, H), jnp.float32),
                                    jnp.zeros((1, H), jnp.float32)], axis=0)
    w1, b1 = _init_linear(ks[1], H, Z)
    p["w1"] = w1.astype(mxu_dt)                                      # (H, Z)
    wloc, bloc = _init_linear(ks[2], Z, Z)
    wsca, bsca = _init_linear(ks[3], Z, Z)
    p["whead"] = jnp.concatenate([wloc, wsca], axis=1)               # (Z, 2Z)
    # stacked (1,Z) vectors: [b1, bn1_g, bn1_beta, bloc, bsca, bn_g, bn_beta]
    p["vecs"] = jnp.concatenate(
        [b1, jnp.ones((1, Z), jnp.float32), jnp.zeros((1, Z), jnp.float32),
         bloc, bsca,
         jnp.ones((1, Z), jnp.float32), jnp.zeros((1, Z), jnp.float32)], axis=0)

    # cls_conv = Conv1d(C, C, 2Z, groups=C): weight (C, 2Z), bias (C,)
    kcw, kcb = jax.random.split(ks[4])
    cb = 1.0 / float(2 * Z) ** 0.5
    conv_w = jax.random.uniform(kcw, (C, 2 * Z), jnp.float32, -cb, cb)
    p["conv_wzT"] = conv_w[:, :Z].T                                  # (Z, C)
    p["conv_wl"] = conv_w[:, Z:]                                     # (C, Z)
    p["conv_b"] = jax.random.uniform(kcb, (1, C), jnp.float32, -cb, cb)

    # TODO(synk): VAE / GAT submodules are not defined in the provided source;
    # deterministic per-view Linear encoders stand in, merged into one static
    # block-diagonal weight so the kernel does a single encoder matmul.
    sum_d = sum(d_list)
    wenc = jnp.zeros((sum_d, V * Z), jnp.float32)
    bencs = []
    off = 0
    for i, d in enumerate(d_list):
        w, b = _init_linear(ks[5 + i], d, Z)
        wenc = wenc.at[off:off + d, i * Z:(i + 1) * Z].set(w)
        bencs.append(b)
        off += d
    p["wenc"] = wenc.astype(mxu_dt)                                  # (sum_d, V*Z)
    p["benc"] = jnp.concatenate(bencs, axis=1)                       # (1, V*Z)
    return p


# ----------------------------------------------------------------------------
# Forward pass: exactly ONE pallas_call.
# ----------------------------------------------------------------------------
def net_forward(params, x_list, mask, sample_key):
    del mask  # TODO(synk): only consumed by the undefined VAE in the original.
    C, Z = params["num_classes"], params["z_dim"]
    V = len(x_list)
    N = x_list[0].shape[0]
    assert params["label_embedding_is_identity"], (
        "in-kernel fast path assumes the identity-initialized label embedding")

    # Pre-averaged noise for gaussian_reparameterization_var(times=5):
    #   result = mu + std * mean_t(eps_t)
    eps_mean = jnp.mean(
        jax.random.normal(sample_key, (5, C, Z), jnp.float32), axis=0)
    x_cat = jnp.concatenate(x_list, axis=1)                          # (N, sum_d)

    kernel = _make_net_kernel(V, N, C, Z)
    out_shapes = (jax.ShapeDtypeStruct((C, Z), jnp.float32),
                  jax.ShapeDtypeStruct(((V + 1) * N, Z), jnp.float32),
                  jax.ShapeDtypeStruct(((V + 2) * N, C), jnp.float32))
    vmem = pl.BlockSpec(memory_space=pltpu.MemorySpace.VMEM)

    label_embedding_sample, z_slab, pred_slab = pl.pallas_call(
        kernel,
        out_shape=out_shapes,
        in_specs=[vmem] * 12,
        out_specs=(vmem, vmem, vmem),
    )(params["w0b0"], params["g0beta0"], params["w1"], params["whead"],
      params["vecs"], eps_mean, x_cat, params["wenc"], params["benc"],
      params["conv_wzT"], params["conv_wl"], params["conv_b"])

    z_sample = z_slab[:N]
    z_sample_list_p = [z_slab[(i + 1) * N:(i + 2) * N] for i in range(V)]
    # reference ordering: fused-z prediction first, then per-view predictions.
    view_predictions = pred_slab[:(V + 1) * N].reshape(V + 1, N, C)
    p_fused = pred_slab[(V + 1) * N:]

    return {
        "z_sample": z_sample,
        "z_sample_list_p": z_sample_list_p,
        "label_embedding_sample": label_embedding_sample,
        "view_predictions": view_predictions,
        "p_fused": p_fused,
    }


# ----------------------------------------------------------------------------
if __name__ == "__main__":
    num_classes, z_dim, batch = 8, 32, 16
    d_list = [24, 32]

    key = jax.random.PRNGKey(0)
    kp, kx0, kx1, ksample = jax.random.split(key, 4)

    params = init_net_params(kp, d_list, num_classes, z_dim)
    x_list = [
        jax.random.normal(kx0, (batch, d_list[0]), jnp.float32),
        jax.random.normal(kx1, (batch, d_list[1]), jnp.float32),
    ]
    mask = jnp.ones((batch, len(d_list)), jnp.float32)

    out = net_forward(params, x_list, mask, ksample)
    jax.block_until_ready(out)

    p = out["p_fused"]
    assert p.shape == (batch, num_classes)
    assert out["view_predictions"].shape == (len(d_list) + 1, batch, num_classes)
    assert out["z_sample"].shape == (batch, z_dim)
    assert out["label_embedding_sample"].shape == (num_classes, z_dim)
    assert bool(jnp.all((p >= 0.0) & (p <= 1.0)))
    assert not bool(jnp.any(jnp.isnan(p)))
    print("KERNEL_OK")
</pallas_src>

<mosaic_0001>
module attributes {stable_mosaic.version = 11 : i64} {
  func.func @kernel(%arg0: memref<9x1024xf32, #tpu.memory_space<vmem>>, %arg1: memref<2x1024xf32, #tpu.memory_space<vmem>>, %arg2: memref<1024x32xbf16, #tpu.memory_space<vmem>>, %arg3: memref<32x64xf32, #tpu.memory_space<vmem>>, %arg4: memref<7x32xf32, #tpu.memory_space<vmem>>, %arg5: memref<8x32xf32, #tpu.memory_space<vmem>>, %arg6: memref<16x56xf32, #tpu.memory_space<vmem>>, %arg7: memref<56x64xbf16, #tpu.memory_space<vmem>>, %arg8: memref<1x64xf32, #tpu.memory_space<vmem>>, %arg9: memref<32x8xf32, #tpu.memory_space<vmem>>, %arg10: memref<8x32xf32, #tpu.memory_space<vmem>>, %arg11: memref<1x8xf32, #tpu.memory_space<vmem>>, %arg12: memref<8x32xf32, #tpu.memory_space<vmem>>, %arg13: memref<48x32xf32, #tpu.memory_space<vmem>>, %arg14: memref<64x8xf32, #tpu.memory_space<vmem>>) attributes {dimension_semantics = [], scalar_prefetch = 0 : i64, scratch_operands = 0 : i64, tpu.core_type = #tpu.core_type<tc>} {
    %c0 = arith.constant 0 : index
    %c0_0 = arith.constant 0 : index
    %0 = vector.load %arg0[%c0, %c0_0] : memref<9x1024xf32, #tpu.memory_space<vmem>>, vector<8x1024xf32>
    %c8 = arith.constant 8 : index
    %c0_1 = arith.constant 0 : index
    %1 = vector.load %arg0[%c8, %c0_1] : memref<9x1024xf32, #tpu.memory_space<vmem>>, vector<1x1024xf32>
    %2 = vector.broadcast %1 : vector<1x1024xf32> to vector<8x1024xf32>
    %3 = arith.addf %0, %2 : vector<8x1024xf32>
    %c0_2 = arith.constant 0 : index
    %c0_3 = arith.constant 0 : index
    %4 = vector.load %arg1[%c0_2, %c0_3] : memref<2x1024xf32, #tpu.memory_space<vmem>>, vector<1x1024xf32>
    %c1 = arith.constant 1 : index
    %c0_4 = arith.constant 0 : index
    %5 = vector.load %arg1[%c1, %c0_4] : memref<2x1024xf32, #tpu.memory_space<vmem>>, vector<1x1024xf32>
    %cst = arith.constant dense<0.000000e+00> : vector<1024xf32>
    %6 = vector.multi_reduction <add>, %3, %cst [0] : vector<8x1024xf32> to vector<1024xf32>
    %7 = vector.shape_cast %6 : vector<1024xf32> to vector<1x1024xf32>
    %cst_5 = arith.constant 1.250000e-01 : f32
    %8 = vector.broadcast %cst_5 : f32 to vector<1x1024xf32>
    %9 = arith.mulf %7, %8 : vector<1x1024xf32>
    %10 = arith.mulf %3, %3 : vector<8x1024xf32>
    %cst_6 = arith.constant dense<0.000000e+00> : vector<1024xf32>
    %11 = vector.multi_reduction <add>, %10, %cst_6 [0] : vector<8x1024xf32> to vector<1024xf32>
    %12 = vector.shape_cast %11 : vector<1024xf32> to vector<1x1024xf32>
    %cst_7 = arith.constant 1.250000e-01 : f32
    %13 = vector.broadcast %cst_7 : f32 to vector<1x1024xf32>
    %14 = arith.mulf %12, %13 : vector<1x1024xf32>
    %15 = arith.mulf %9, %9 : vector<1x1024xf32>
    %16 = arith.subf %14, %15 : vector<1x1024xf32>
    %17 = vector.broadcast %9 : vector<1x1024xf32> to vector<8x1024xf32>
    %18 = arith.subf %3, %17 : vector<8x1024xf32>
    %cst_8 = arith.constant 9.99999974E-6 : f32
    %19 = vector.broadcast %cst_8 : f32 to vector<1x1024xf32>
    %20 = arith.addf %16, %19 : vector<1x1024xf32>
    %21 = math.rsqrt %20 : vector<1x1024xf32>
    %22 = vector.broadcast %21 : vector<1x1024xf32> to vector<8x1024xf32>
    %23 = arith.mulf %18, %22 : vector<8x1024xf32>
    %24 = vector.broadcast %4 : vector<1x1024xf32> to vector<8x1024xf32>
    %25 = arith.mulf %23, %24 : vector<8x1024xf32>
    %26 = vector.broadcast %5 : vector<1x1024xf32> to vector<8x1024xf32>
    %27 = arith.addf %25, %26 : vector<8x1024xf32>
    %cst_9 = arith.constant 5.000000e-01 : f32
    %28 = vector.broadcast %cst_9 : f32 to vector<8x1024xf32>
    %29 = arith.mulf %28, %27 : vector<8x1024xf32>
    %cst_10 = arith.constant 0.707106769 : f32
    %30 = vector.broadcast %cst_10 : f32 to vector<8x1024xf32>
    %31 = arith.mulf %27, %30 : vector<8x1024xf32>
    %cst_11 = arith.constant 0.000000e+00 : f32
    %32 = vector.broadcast %cst_11 : f32 to vector<8x1024xf32>
    %33 = arith.cmpf oge, %31, %32 : vector<8x1024xf32>
    %cst_12 = arith.constant 1.000000e+00 : f32
    %cst_13 = arith.constant -1.000000e+00 : f32
    %34 = vector.broadcast %cst_12 : f32 to vector<8x1024xf32>
    %35 = vector.broadcast %cst_13 : f32 to vector<8x1024xf32>
    %36 = arith.select %33, %34, %35 : vector<8x1024xi1>, vector<8x1024xf32>
    %37 = math.absf %31 : vector<8x1024xf32>
    %cst_14 = arith.constant 0.327591091 : f32
    %38 = vector.broadcast %cst_14 : f32 to vector<8x1024xf32>
    %39 = arith.mulf %38, %37 : vector<8x1024xf32>
    %cst_15 = arith.constant 1.000000e+00 : f32
    %40 = vector.broadcast %cst_15 : f32 to vector<8x1024xf32>
    %41 = arith.addf %40, %39 : vector<8x1024xf32>
    %cst_16 = arith.constant 1.000000e+00 : f32
    %42 = vector.broadcast %cst_16 : f32 to vector<8x1024xf32>
    %43 = arith.divf %42, %41 : vector<8x1024xf32>
    %cst_17 = arith.constant 1.06140542 : f32
    %44 = vector.broadcast %cst_17 : f32 to vector<8x1024xf32>
    %45 = arith.mulf %44, %43 : vector<8x1024xf32>
    %cst_18 = arith.constant -1.45315206 : f32
    %46 = vector.broadcast %cst_18 : f32 to vector<8x1024xf32>
    %47 = arith.addf %45, %46 : vector<8x1024xf32>
    %48 = arith.mulf %47, %43 : vector<8x1024xf32>
    %cst_19 = arith.constant 1.42141378 : f32
    %49 = vector.broadcast %cst_19 : f32 to vector<8x1024xf32>
    %50 = arith.addf %48, %49 : vector<8x1024xf32>
    %51 = arith.mulf %50, %43 : vector<8x1024xf32>
    %cst_20 = arith.constant -0.284496725 : f32
    %52 = vector.broadcast %cst_20 : f32 to vector<8x1024xf32>
    %53 = arith.addf %51, %52 : vector<8x1024xf32>
    %54 = arith.mulf %53, %43 : vector<8x1024xf32>
    %cst_21 = arith.constant 0.254829586 : f32
    %55 = vector.broadcast %cst_21 : f32 to vector<8x1024xf32>
    %56 = arith.addf %54, %55 : vector<8x1024xf32>
    %57 = arith.mulf %56, %43 : vector<8x1024xf32>
    %cst_22 = arith.constant 0.000000e+00 : f32
    %58 = vector.broadcast %cst_22 : f32 to vector<8x1024xf32>
    %59 = arith.subf %58, %37 : vector<8x1024xf32>
    %60 = arith.mulf %59, %37 : vector<8x1024xf32>
    %61 = math.exp %60 : vector<8x1024xf32>
    %62 = arith.mulf %57, %61 : vector<8x1024xf32>
    %cst_23 = arith.constant 1.000000e+00 : f32
    %63 = vector.broadcast %cst_23 : f32 to vector<8x1024xf32>
    %64 = arith.subf %63, %62 : vector<8x1024xf32>
    %65 = arith.mulf %36, %64 : vector<8x1024xf32>
    %cst_24 = arith.constant 1.000000e+00 : f32
    %66 = vector.broadcast %cst_24 : f32 to vector<8x1024xf32>
    %67 = arith.addf %66, %65 : vector<8x1024xf32>
    %68 = arith.mulf %29, %67 : vector<8x1024xf32>
    %69 = arith.truncf %68 : vector<8x1024xf32> to vector<8x1024xbf16>
    %c0_25 = arith.constant 0 : index
    %c0_26 = arith.constant 0 : index
    %70 = vector.load %arg2[%c0_25, %c0_26] : memref<1024x32xbf16, #tpu.memory_space<vmem>>, vector<1024x32xbf16>
    %cst_27 = arith.constant dense<0.000000e+00> : vector<8x32xf32>
    %71 = tpu.matmul %69, %70, %cst_27 {dimension_numbers = #tpu.dot_dimension_numbers<[1], [0], [0], [1], [0, 0, 1, 1], [], []>} : vector<8x1024xbf16>, vector<1024x32xbf16>, vector<8x32xf32> -> vector<8x32xf32>
    %c0_28 = arith.constant 0 : index
    %c0_29 = arith.constant 0 : index
    %72 = vector.load %arg4[%c0_28, %c0_29] : memref<7x32xf32, #tpu.memory_space<vmem>>, vector<1x32xf32>
    %73 = vector.broadcast %72 : vector<1x32xf32> to vector<8x32xf32>
    %74 = arith.addf %71, %73 : vector<8x32xf32>
    %c1_30 = arith.constant 1 : index
    %c0_31 = arith.constant 0 : index
    %75 = vector.load %arg4[%c1_30, %c0_31] : memref<7x32xf32, #tpu.memory_space<vmem>>, vector<1x32xf32>
    %c2 = arith.constant 2 : index
    %c0_32 = arith.constant 0 : index
    %76 = vector.load %arg4[%c2, %c0_32] : memref<7x32xf32, #tpu.memory_space<vmem>>, vector<1x32xf32>
    %cst_33 = arith.constant dense<0.000000e+00> : vector<32xf32>
    %77 = vector.multi_reduction <add>, %74, %cst_33 [0] : vector<8x32xf32> to vector<32xf32>
    %78 = vector.shape_cast %77 : vector<32xf32> to vector<1x32xf32>
    %cst_34 = arith.constant 1.250000e-01 : f32
    %79 = vector.broadcast %cst_34 : f32 to vector<1x32xf32>
    %80 = arith.mulf %78, %79 : vector<1x32xf32>
    %81 = arith.mulf %74, %74 : vector<8x32xf32>
    %cst_35 = arith.constant dense<0.000000e+00> : vector<32xf32>
    %82 = vector.multi_reduction <add>, %81, %cst_35 [0] : vector<8x32xf32> to vector<32xf32>
    %83 = vector.shape_cast %82 : vector<32xf32> to vector<1x32xf32>
    %cst_36 = arith.constant 1.250000e-01 : f32
    %84 = vector.broadcast %cst_36 : f32 to vector<1x32xf32>
    %85 = arith.mulf %83, %84 : vector<1x32xf32>
    %86 = arith.mulf %80, %80 : vector<1x32xf32>
    %87 = arith.subf %85, %86 : vector<1x32xf32>
    %88 = vector.broadcast %80 : vector<1x32xf32> to vector<8x32xf32>
    %89 = arith.subf %74, %88 : vector<8x32xf32>
    %cst_37 = arith.constant 9.99999974E-6 : f32
    %90 = vector.broadcast %cst_37 : f32 to vector<1x32xf32>
    %91 = arith.addf %87, %90 : vector<1x32xf32>
    %92 = math.rsqrt %91 : vector<1x32xf32>
    %93 = vector.broadcast %92 : vector<1x32xf32> to vector<8x32xf32>
    %94 = arith.mulf %89, %93 : vector<8x32xf32>
    %95 = vector.broadcast %75 : vector<1x32xf32> to vector<8x32xf32>
    %96 = arith.mulf %94, %95 : vector<8x32xf32>
    %97 = vector.broadcast %76 : vector<1x32xf32> to vector<8x32xf32>
    %98 = arith.addf %96, %97 : vector<8x32xf32>
    %cst_38 = arith.constant 5.000000e-01 : f32
    %99 = vector.broadcast %cst_38 : f32 to vector<8x32xf32>
    %100 = arith.mulf %99, %98 : vector<8x32xf32>
    %cst_39 = arith.constant 0.707106769 : f32
    %101 = vector.broadcast %cst_39 : f32 to vector<8x32xf32>
    %102 = arith.mulf %98, %101 : vector<8x32xf32>
    %cst_40 = arith.constant 0.000000e+00 : f32
    %103 = vector.broadcast %cst_40 : f32 to vector<8x32xf32>
    %104 = arith.cmpf oge, %102, %103 : vector<8x32xf32>
    %cst_41 = arith.constant 1.000000e+00 : f32
    %cst_42 = arith.constant -1.000000e+00 : f32
    %105 = vector.broadcast %cst_41 : f32 to vector<8x32xf32>
    %106 = vector.broadcast %cst_42 : f32 to vector<8x32xf32>
    %107 = arith.select %104, %105, %106 : vector<8x32xi1>, vector<8x32xf32>
    %108 = math.absf %102 : vector<8x32xf32>
    %cst_43 = arith.constant 0.327591091 : f32
    %109 = vector.broadcast %cst_43 : f32 to vector<8x32xf32>
    %110 = arith.mulf %109, %108 : vector<8x32xf32>
    %cst_44 = arith.constant 1.000000e+00 : f32
    %111 = vector.broadcast %cst_44 : f32 to vector<8x32xf32>
    %112 = arith.addf %111, %110 : vector<8x32xf32>
    %cst_45 = arith.constant 1.000000e+00 : f32
    %113 = vector.broadcast %cst_45 : f32 to vector<8x32xf32>
    %114 = arith.divf %113, %112 : vector<8x32xf32>
    %cst_46 = arith.constant 1.06140542 : f32
    %115 = vector.broadcast %cst_46 : f32 to vector<8x32xf32>
    %116 = arith.mulf %115, %114 : vector<8x32xf32>
    %cst_47 = arith.constant -1.45315206 : f32
    %117 = vector.broadcast %cst_47 : f32 to vector<8x32xf32>
    %118 = arith.addf %116, %117 : vector<8x32xf32>
    %119 = arith.mulf %118, %114 : vector<8x32xf32>
    %cst_48 = arith.constant 1.42141378 : f32
    %120 = vector.broadcast %cst_48 : f32 to vector<8x32xf32>
    %121 = arith.addf %119, %120 : vector<8x32xf32>
    %122 = arith.mulf %121, %114 : vector<8x32xf32>
    %cst_49 = arith.constant -0.284496725 : f32
    %123 = vector.broadcast %cst_49 : f32 to vector<8x32xf32>
    %124 = arith.addf %122, %123 : vector<8x32xf32>
    %125 = arith.mulf %124, %114 : vector<8x32xf32>
    %cst_50 = arith.constant 0.254829586 : f32
    %126 = vector.broadcast %cst_50 : f32 to vector<8x32xf32>
    %127 = arith.addf %125, %126 : vector<8x32xf32>
    %128 = arith.mulf %127, %114 : vector<8x32xf32>
    %cst_51 = arith.constant 0.000000e+00 : f32
    %129 = vector.broadcast %cst_51 : f32 to vector<8x32xf32>
    %130 = arith.subf %129, %108 : vector<8x32xf32>
    %131 = arith.mulf %130, %108 : vector<8x32xf32>
    %132 = math.exp %131 : vector<8x32xf32>
    %133 = arith.mulf %128, %132 : vector<8x32xf32>
    %cst_52 = arith.constant 1.000000e+00 : f32
    %134 = vector.broadcast %cst_52 : f32 to vector<8x32xf32>
    %135 = arith.subf %134, %133 : vector<8x32xf32>
    %136 = arith.mulf %107, %135 : vector<8x32xf32>
    %cst_53 = arith.constant 1.000000e+00 : f32
    %137 = vector.broadcast %cst_53 : f32 to vector<8x32xf32>
    %138 = arith.addf %137, %136 : vector<8x32xf32>
    %139 = arith.mulf %100, %138 : vector<8x32xf32>
    %c0_54 = arith.constant 0 : index
    %c0_55 = arith.constant 0 : index
    %140 = vector.load %arg3[%c0_54, %c0_55] : memref<32x64xf32, #tpu.memory_space<vmem>>, vector<32x64xf32>
    %cst_56 = arith.constant dense<0.000000e+00> : vector<8x64xf32>
    %141 = tpu.matmul %139, %140, %cst_56 {dimension_numbers = #tpu.dot_dimension_numbers<[1], [0], [0], [1], [0, 0, 1, 1], [], []>} : vector<8x32xf32>, vector<32x64xf32>, vector<8x64xf32> -> vector<8x64xf32>
    %142 = vector.extract_strided_slice %141 {offsets = [0, 0], sizes = [8, 32], strides = [1, 1]} : vector<8x64xf32> to vector<8x32xf32>
    %c3 = arith.constant 3 : index
    %c0_57 = arith.constant 0 : index
    %143 = vector.load %arg4[%c3, %c0_57] : memref<7x32xf32, #tpu.memory_space<vmem>>, vector<1x32xf32>
    %144 = vector.broadcast %143 : vector<1x32xf32> to vector<8x32xf32>
    %145 = arith.addf %142, %144 : vector<8x32xf32>
    %146 = vector.extract_strided_slice %141 {offsets = [0, 32], sizes = [8, 32], strides = [1, 1]} : vector<8x64xf32> to vector<8x32xf32>
    %c4 = arith.constant 4 : index
    %c0_58 = arith.constant 0 : index
    %147 = vector.load %arg4[%c4, %c0_58] : memref<7x32xf32, #tpu.memory_space<vmem>>, vector<1x32xf32>
    %148 = vector.broadcast %147 : vector<1x32xf32> to vector<8x32xf32>
    %149 = arith.addf %146, %148 : vector<8x32xf32>
    %cst_59 = arith.constant 0.000000e+00 : f32
    %150 = vector.broadcast %cst_59 : f32 to vector<8x32xf32>
    %151 = arith.maximumf %149, %150 : vector<8x32xf32>
    %152 = math.absf %149 : vector<8x32xf32>
    %cst_60 = arith.constant 0.000000e+00 : f32
    %153 = vector.broadcast %cst_60 : f32 to vector<8x32xf32>
    %154 = arith.subf %153, %152 : vector<8x32xf32>
    %155 = math.exp %154 : vector<8x32xf32>
    %cst_61 = arith.constant 1.000000e+00 : f32
    %156 = vector.broadcast %cst_61 : f32 to vector<8x32xf32>
    %157 = arith.addf %156, %155 : vector<8x32xf32>
    %158 = math.log %157 : vector<8x32xf32>
    %159 = arith.addf %151, %158 : vector<8x32xf32>
    %cst_62 = arith.constant 9.99999993E-9 : f32
    %160 = vector.broadcast %cst_62 : f32 to vector<8x32xf32>
    %161 = arith.addf %159, %160 : vector<8x32xf32>
    %162 = math.sqrt %161 : vector<8x32xf32>
    %c0_63 = arith.constant 0 : index
    %c0_64 = arith.constant 0 : index
    %163 = vector.load %arg5[%c0_63, %c0_64] : memref<8x32xf32, #tpu.memory_space<vmem>>, vector<8x32xf32>
    %164 = arith.mulf %162, %163 : vector<8x32xf32>
    %165 = arith.addf %145, %164 : vector<8x32xf32>
    %c0_65 = arith.constant 0 : index
    %c0_66 = arith.constant 0 : index
    %166 = vector.load %arg12[%c0_65, %c0_66] : memref<8x32xf32, #tpu.memory_space<vmem>>, vector<8x32xf32>
    tpu.vector_store %arg12[%c0_65, %c0_66], %165 {strides = array<i32>} : memref<8x32xf32, #tpu.memory_space<vmem>>, vector<8x32xf32>,
    %c0_67 = arith.constant 0 : index
    %c0_68 = arith.constant 0 : index
    %167 = vector.load %arg6[%c0_67, %c0_68] : memref<16x56xf32, #tpu.memory_space<vmem>>, vector<16x56xf32>
    %168 = arith.truncf %167 : vector<16x56xf32> to vector<16x56xbf16>
    %c0_69 = arith.constant 0 : index
    %c0_70 = arith.constant 0 : index
    %169 = vector.load %arg7[%c0_69, %c0_70] : memref<56x64xbf16, #tpu.memory_space<vmem>>, vector<56x64xbf16>
    %cst_71 = arith.constant dense<0.000000e+00> : vector<16x64xf32>
    %170 = tpu.matmul %168, %169, %cst_71 {dimension_numbers = #tpu.dot_dimension_numbers<[1], [0], [0], [1], [0, 0, 1, 1], [], []>} : vector<16x56xbf16>, vector<56x64xbf16>, vector<16x64xf32> -> vector<16x64xf32>
    %c0_72 = arith.constant 0 : index
    %c0_73 = arith.constant 0 : index
    %171 = vector.load %arg8[%c0_72, %c0_73] : memref<1x64xf32, #tpu.memory_space<vmem>>, vector<1x64xf32>
    %172 = vector.broadcast %171 : vector<1x64xf32> to vector<16x64xf32>
    %173 = arith.addf %170, %172 : vector<16x64xf32>
    %174 = vector.extract_strided_slice %173 {offsets = [0, 0], sizes = [16, 32], strides = [1, 1]} : vector<16x64xf32> to vector<16x32xf32>
    %175 = vector.extract_strided_slice %173 {offsets = [0, 32], sizes = [16, 32], strides = [1, 1]} : vector<16x64xf32> to vector<16x32xf32>
    %176 = arith.addf %174, %175 : vector<16x32xf32>
    %cst_74 = arith.constant 5.000000e-01 : f32
    %177 = vector.broadcast %cst_74 : f32 to vector<16x32xf32>
    %178 = arith.mulf %176, %177 : vector<16x32xf32>
    %c5 = arith.constant 5 : index
    %c0_75 = arith.constant 0 : index
    %179 = vector.load %arg4[%c5, %c0_75] : memref<7x32xf32, #tpu.memory_space<vmem>>, vector<1x32xf32>
    %c6 = arith.constant 6 : index
    %c0_76 = arith.constant 0 : index
    %180 = vector.load %arg4[%c6, %c0_76] : memref<7x32xf32, #tpu.memory_space<vmem>>, vector<1x32xf32>
    %cst_77 = arith.constant dense<0.000000e+00> : vector<32xf32>
    %181 = vector.multi_reduction <add>, %178, %cst_77 [0] : vector<16x32xf32> to vector<32xf32>
    %182 = vector.shape_cast %181 : vector<32xf32> to vector<1x32xf32>
    %cst_78 = arith.constant 6.250000e-02 : f32
    %183 = vector.broadcast %cst_78 : f32 to vector<1x32xf32>
    %184 = arith.mulf %182, %183 : vector<1x32xf32>
    %185 = arith.mulf %178, %178 : vector<16x32xf32>
    %cst_79 = arith.constant dense<0.000000e+00> : vector<32xf32>
    %186 = vector.multi_reduction <add>, %185, %cst_79 [0] : vector<16x32xf32> to vector<32xf32>
    %187 = vector.shape_cast %186 : vector<32xf32> to vector<1x32xf32>
    %cst_80 = arith.constant 6.250000e-02 : f32
    %188 = vector.broadcast %cst_80 : f32 to vector<1x32xf32>
    %189 = arith.mulf %187, %188 : vector<1x32xf32>
    %190 = arith.mulf %184, %184 : vector<1x32xf32>
    %191 = arith.subf %189, %190 : vector<1x32xf32>
    %192 = vector.broadcast %184 : vector<1x32xf32> to vector<16x32xf32>
    %193 = arith.subf %178, %192 : vector<16x32xf32>
    %cst_81 = arith.constant 9.99999974E-6 : f32
    %194 = vector.broadcast %cst_81 : f32 to vector<1x32xf32>
    %195 = arith.addf %191, %194 : vector<1x32xf32>
    %196 = math.rsqrt %195 : vector<1x32xf32>
    %197 = vector.broadcast %196 : vector<1x32xf32> to vector<16x32xf32>
    %198 = arith.mulf %193, %197 : vector<16x32xf32>
    %199 = vector.broadcast %179 : vector<1x32xf32> to vector<16x32xf32>
    %200 = arith.mulf %198, %199 : vector<16x32xf32>
    %201 = vector.broadcast %180 : vector<1x32xf32> to vector<16x32xf32>
    %202 = arith.addf %200, %201 : vector<16x32xf32>
    %cst_82 = arith.constant 0.000000e+00 : f32
    %203 = vector.broadcast %cst_82 : f32 to vector<16x32xf32>
    %204 = arith.maximumf %202, %203 : vector<16x32xf32>
    %c0_83 = arith.constant 0 : index
    %c0_84 = arith.constant 0 : index
    %205 = vector.load %arg13[%c0_83, %c0_84] : memref<48x32xf32, #tpu.memory_space<vmem>>, vector<16x32xf32>
    tpu.vector_store %arg13[%c0_83, %c0_84], %204 {strides = array<i32>} : memref<48x32xf32, #tpu.memory_space<vmem>>, vector<16x32xf32>,
    %cst_85 = arith.constant dense<0.000000e+00> : vector<32xf32>
    %206 = vector.multi_reduction <add>, %174, %cst_85 [0] : vector<16x32xf32> to vector<32xf32>
    %207 = vector.shape_cast %206 : vector<32xf32> to vector<1x32xf32>
    %cst_86 = arith.constant 6.250000e-02 : f32
    %208 = vector.broadcast %cst_86 : f32 to vector<1x32xf32>
    %209 = arith.mulf %207, %208 : vector<1x32xf32>
    %210 = arith.mulf %174, %174 : vector<16x32xf32>
    %cst_87 = arith.constant dense<0.000000e+00> : vector<32xf32>
    %211 = vector.multi_reduction <add>, %210, %cst_87 [0] : vector<16x32xf32> to vector<32xf32>
    %212 = vector.shape_cast %211 : vector<32xf32> to vector<1x32xf32>
    %cst_88 = arith.constant 6.250000e-02 : f32
    %213 = vector.broadcast %cst_88 : f32 to vector<1x32xf32>
    %214 = arith.mulf %212, %213 : vector<1x32xf32>
    %215 = arith.mulf %209, %209 : vector<1x32xf32>
    %216 = arith.subf %214, %215 : vector<1x32xf32>
    %217 = vector.broadcast %209 : vector<1x32xf32> to vector<16x32xf32>
    %218 = arith.subf %174, %217 : vector<16x32xf32>
    %cst_89 = arith.constant 9.99999974E-6 : f32
    %219 = vector.broadcast %cst_89 : f32 to vector<1x32xf32>
    %220 = arith.addf %216, %219 : vector<1x32xf32>
    %221 = math.rsqrt %220 : vector<1x32xf32>
    %222 = vector.broadcast %221 : vector<1x32xf32> to vector<16x32xf32>
    %223 = arith.mulf %218, %222 : vector<16x32xf32>
    %224 = vector.broadcast %179 : vector<1x32xf32> to vector<16x32xf32>
    %225 = arith.mulf %223, %224 : vector<16x32xf32>
    %226 = vector.broadcast %180 : vector<1x32xf32> to vector<16x32xf32>
    %227 = arith.addf %225, %226 : vector<16x32xf32>
    %cst_90 = arith.constant 0.000000e+00 : f32
    %228 = vector.broadcast %cst_90 : f32 to vector<16x32xf32>
    %229 = arith.maximumf %227, %228 : vector<16x32xf32>
    %c16 = arith.constant 16 : index
    %c0_91 = arith.constant 0 : index
    %230 = vector.load %arg13[%c16, %c0_91] : memref<48x32xf32, #tpu.memory_space<vmem>>, vector<16x32xf32>
    tpu.vector_store %arg13[%c16, %c0_91], %229 {strides = array<i32>} : memref<48x32xf32, #tpu.memory_space<vmem>>, vector<16x32xf32>,
    %cst_92 = arith.constant dense<0.000000e+00> : vector<32xf32>
    %231 = vector.multi_reduction <add>, %175, %cst_92 [0] : vector<16x32xf32> to vector<32xf32>
    %232 = vector.shape_cast %231 : vector<32xf32> to vector<1x32xf32>
    %cst_93 = arith.constant 6.250000e-02 : f32
    %233 = vector.broadcast %cst_93 : f32 to vector<1x32xf32>
    %234 = arith.mulf %232, %233 : vector<1x32xf32>
    %235 = arith.mulf %175, %175 : vector<16x32xf32>
    %cst_94 = arith.constant dense<0.000000e+00> : vector<32xf32>
    %236 = vector.multi_reduction <add>, %235, %cst_94 [0] : vector<16x32xf32> to vector<32xf32>
    %237 = vector.shape_cast %236 : vector<32xf32> to vector<1x32xf32>
    %cst_95 = arith.constant 6.250000e-02 : f32
    %238 = vector.broadcast %cst_95 : f32 to vector<1x32xf32>
    %239 = arith.mulf %237, %238 : vector<1x32xf32>
    %240 = arith.mulf %234, %234 : vector<1x32xf32>
    %241 = arith.subf %239, %240 : vector<1x32xf32>
    %242 = vector.broadcast %234 : vector<1x32xf32> to vector<16x32xf32>
    %243 = arith.subf %175, %242 : vector<16x32xf32>
    %cst_96 = arith.constant 9.99999974E-6 : f32
    %244 = vector.broadcast %cst_96 : f32 to vector<1x32xf32>
    %245 = arith.addf %241, %244 : vector<1x32xf32>
    %246 = math.rsqrt %245 : vector<1x32xf32>
    %247 = vector.broadcast %246 : vector<1x32xf32> to vector<16x32xf32>
    %248 = arith.mulf %243, %247 : vector<16x32xf32>
    %249 = vector.broadcast %179 : vector<1x32xf32> to vector<16x32xf32>
    %250 = arith.mulf %248, %249 : vector<16x32xf32>
    %251 = vector.broadcast %180 : vector<1x32xf32> to vector<16x32xf32>
    %252 = arith.addf %250, %251 : vector<16x32xf32>
    %cst_97 = arith.constant 0.000000e+00 : f32
    %253 = vector.broadcast %cst_97 : f32 to vector<16x32xf32>
    %254 = arith.maximumf %252, %253 : vector<16x32xf32>
    %c32 = arith.constant 32 : index
    %c0_98 = arith.constant 0 : index
    %255 = vector.load %arg13[%c32, %c0_98] : memref<48x32xf32, #tpu.memory_space<vmem>>, vector<16x32xf32>
    tpu.vector_store %arg13[%c32, %c0_98], %254 {strides = array<i32>} : memref<48x32xf32, #tpu.memory_space<vmem>>, vector<16x32xf32>,
    %cst_99 = arith.constant 1.000000e+00 : f32
    %256 = vector.broadcast %cst_99 : f32 to vector<8x32xf32>
    %c0_100 = arith.constant 0 : index
    %c0_101 = arith.constant 0 : index
    %257 = vector.load %arg10[%c0_100, %c0_101] : memref<8x32xf32, #tpu.memory_space<vmem>>, vector<8x32xf32>
    %258 = arith.mulf %165, %257 : vector<8x32xf32>
    %cst_102 = arith.constant dense<0.000000e+00> : vector<8x8xf32>
    %259 = tpu.matmul %256, %258, %cst_102 {dimension_numbers = #tpu.dot_dimension_numbers<[1], [1], [0], [0], [0, 0, 1, 0], [], []>} : vector<8x32xf32>, vector<8x32xf32>, vector<8x8xf32> -> vector<8x8xf32>
    %260 = vector.extract_strided_slice %259 {offsets = [0, 0], sizes = [1, 8], strides = [1, 1]} : vector<8x8xf32> to vector<1x8xf32>
    %c0_103 = arith.constant 0 : index
    %c0_104 = arith.constant 0 : index
    %261 = vector.load %arg13[%c0_103, %c0_104] : memref<48x32xf32, #tpu.memory_space<vmem>>, vector<48x32xf32>
    %c0_105 = arith.constant 0 : index
    %c0_106 = arith.constant 0 : index
    %262 = vector.load %arg9[%c0_105, %c0_106] : memref<32x8xf32, #tpu.memory_space<vmem>>, vector<32x8xf32>
    %cst_107 = arith.constant dense<0.000000e+00> : vector<48x8xf32>
    %263 = tpu.matmul %261, %262, %cst_107 {dimension_numbers = #tpu.dot_dimension_numbers<[1], [0], [0], [1], [0, 0, 1, 1], [], []>} : vector<48x32xf32>, vector<32x8xf32>, vector<48x8xf32> -> vector<48x8xf32>
    %264 = vector.broadcast %260 : vector<1x8xf32> to vector<48x8xf32>
    %265 = arith.addf %263, %264 : vector<48x8xf32>
    %c0_108 = arith.constant 0 : index
    %c0_109 = arith.constant 0 : index
    %266 = vector.load %arg11[%c0_108, %c0_109] : memref<1x8xf32, #tpu.memory_space<vmem>>, vector<1x8xf32>
    %267 = vector.broadcast %266 : vector<1x8xf32> to vector<48x8xf32>
    %268 = arith.addf %265, %267 : vector<48x8xf32>
    %cst_110 = arith.constant 0.000000e+00 : f32
    %269 = vector.broadcast %cst_110 : f32 to vector<48x8xf32>
    %270 = arith.subf %269, %268 : vector<48x8xf32>
    %cst_111 = arith.constant 0.000000e+00 : f32
    %271 = vector.broadcast %cst_111 : f32 to vector<48x8xf32>
    %272 = arith.maximumf %270, %271 : vector<48x8xf32>
    %273 = math.absf %268 : vector<48x8xf32>
    %cst_112 = arith.constant 0.000000e+00 : f32
    %274 = vector.broadcast %cst_112 : f32 to vector<48x8xf32>
    %275 = arith.subf %274, %273 : vector<48x8xf32>
    %276 = math.exp %275 : vector<48x8xf32>
    %cst_113 = arith.constant 1.000000e+00 : f32
    %277 = vector.broadcast %cst_113 : f32 to vector<48x8xf32>
    %278 = arith.addf %277, %276 : vector<48x8xf32>
    %279 = math.log %278 : vector<48x8xf32>
    %280 = arith.addf %272, %279 : vector<48x8xf32>
    %cst_114 = arith.constant 0.000000e+00 : f32
    %281 = vector.broadcast %cst_114 : f32 to vector<48x8xf32>
    %282 = arith.subf %281, %280 : vector<48x8xf32>
    %283 = math.exp %282 : vector<48x8xf32>
    %cst_115 = arith.constant 9.99999974E-6 : f32
    %284 = vector.broadcast %cst_115 : f32 to vector<48x8xf32>
    %285 = arith.addf %283, %284 : vector<48x8xf32>
    %286 = math.log %285 : vector<48x8xf32>
    %287 = arith.mulf %283, %286 : vector<48x8xf32>
    %cst_116 = arith.constant 1.000000e+00 : f32
    %288 = vector.broadcast %cst_116 : f32 to vector<48x8xf32>
    %289 = arith.subf %288, %283 : vector<48x8xf32>
    %cst_117 = arith.constant 1.000000e+00 : f32
    %290 = vector.broadcast %cst_117 : f32 to vector<48x8xf32>
    %291 = arith.subf %290, %283 : vector<48x8xf32>
    %cst_118 = arith.constant 9.99999974E-6 : f32
    %292 = vector.broadcast %cst_118 : f32 to vector<48x8xf32>
    %293 = arith.addf %291, %292 : vector<48x8xf32>
    %294 = math.log %293 : vector<48x8xf32>
    %295 = arith.mulf %289, %294 : vector<48x8xf32>
    %296 = arith.addf %287, %295 : vector<48x8xf32>
    %cst_119 = arith.constant 0.000000e+00 : f32
    %297 = vector.broadcast %cst_119 : f32 to vector<48x8xf32>
    %298 = arith.subf %297, %296 : vector<48x8xf32>
    %c0_120 = arith.constant 0 : index
    %c0_121 = arith.constant 0 : index
    %299 = vector.load %arg14[%c0_120, %c0_121] : memref<64x8xf32, #tpu.memory_space<vmem>>, vector<48x8xf32>
    tpu.vector_store %arg14[%c0_120, %c0_121], %283 {strides = array<i32>} : memref<64x8xf32, #tpu.memory_space<vmem>>, vector<48x8xf32>,
    %300 = vector.extract_strided_slice %283 {offsets = [0, 0], sizes = [16, 8], strides = [1, 1]} : vector<48x8xf32> to vector<16x8xf32>
    %301 = vector.extract_strided_slice %283 {offsets = [16, 0], sizes = [16, 8], strides = [1, 1]} : vector<48x8xf32> to vector<16x8xf32>
    %302 = vector.extract_strided_slice %283 {offsets = [32, 0], sizes = [16, 8], strides = [1, 1]} : vector<48x8xf32> to vector<16x8xf32>
    %303 = vector.extract_strided_slice %298 {offsets = [0, 0], sizes = [16, 8], strides = [1, 1]} : vector<48x8xf32> to vector<16x8xf32>
    %304 = vector.extract_strided_slice %298 {offsets = [16, 0], sizes = [16, 8], strides = [1, 1]} : vector<48x8xf32> to vector<16x8xf32>
    %305 = vector.extract_strided_slice %298 {offsets = [32, 0], sizes = [16, 8], strides = [1, 1]} : vector<48x8xf32> to vector<16x8xf32>
    %cst_122 = arith.constant 9.99999974E-6 : f32
    %306 = vector.broadcast %cst_122 : f32 to vector<16x8xf32>
    %307 = arith.cmpf ogt, %303, %306 : vector<16x8xf32>
    %cst_123 = arith.constant 9.99999974E-6 : f32
    %308 = vector.broadcast %cst_123 : f32 to vector<16x8xf32>
    %309 = arith.addf %303, %308 : vector<16x8xf32>
    %cst_124 = arith.constant 1.000000e+00 : f32
    %310 = vector.broadcast %cst_124 : f32 to vector<16x8xf32>
    %311 = arith.divf %310, %309 : vector<16x8xf32>
    %cst_125 = arith.constant 0.000000e+00 : f32
    %312 = vector.broadcast %cst_125 : f32 to vector<16x8xf32>
    %313 = arith.select %307, %311, %312 : vector<16x8xi1>, vector<16x8xf32>
    %cst_126 = arith.constant 9.99999974E-6 : f32
    %314 = vector.broadcast %cst_126 : f32 to vector<16x8xf32>
    %315 = arith.cmpf ogt, %304, %314 : vector<16x8xf32>
    %cst_127 = arith.constant 9.99999974E-6 : f32
    %316 = vector.broadcast %cst_127 : f32 to vector<16x8xf32>
    %317 = arith.addf %304, %316 : vector<16x8xf32>
    %cst_128 = arith.constant 1.000000e+00 : f32
    %318 = vector.broadcast %cst_128 : f32 to vector<16x8xf32>
    %319 = arith.divf %318, %317 : vector<16x8xf32>
    %cst_129 = arith.constant 0.000000e+00 : f32
    %320 = vector.broadcast %cst_129 : f32 to vector<16x8xf32>
    %321 = arith.select %315, %319, %320 : vector<16x8xi1>, vector<16x8xf32>
    %cst_130 = arith.constant 9.99999974E-6 : f32
    %322 = vector.broadcast %cst_130 : f32 to vector<16x8xf32>
    %323 = arith.cmpf ogt, %305, %322 : vector<16x8xf32>
    %cst_131 = arith.constant 9.99999974E-6 : f32
    %324 = vector.broadcast %cst_131 : f32 to vector<16x8xf32>
    %325 = arith.addf %305, %324 : vector<16x8xf32>
    %cst_132 = arith.constant 1.000000e+00 : f32
    %326 = vector.broadcast %cst_132 : f32 to vector<16x8xf32>
    %327 = arith.divf %326, %325 : vector<16x8xf32>
    %cst_133 = arith.constant 0.000000e+00 : f32
    %328 = vector.broadcast %cst_133 : f32 to vector<16x8xf32>
    %329 = arith.select %323, %327, %328 : vector<16x8xi1>, vector<16x8xf32>
    %330 = arith.addf %313, %321 : vector<16x8xf32>
    %331 = arith.addf %330, %329 : vector<16x8xf32>
    %cst_134 = arith.constant 0.000000e+00 : f32
    %332 = vector.broadcast %cst_134 : f32 to vector<16x8xf32>
    %333 = arith.cmpf one, %331, %332 : vector<16x8xf32>
    %cst_135 = arith.constant 1.000000e+00 : f32
    %334 = vector.broadcast %cst_135 : f32 to vector<16x8xf32>
    %335 = arith.divf %334, %331 : vector<16x8xf32>
    %cst_136 = arith.constant 0.000000e+00 : f32
    %336 = vector.broadcast %cst_136 : f32 to vector<16x8xf32>
    %337 = arith.select %333, %335, %336 : vector<16x8xi1>, vector<16x8xf32>
    %cst_137 = arith.constant 0.000000e+00 : f32
    %338 = vector.broadcast %cst_137 : f32 to vector<16x8xf32>
    %339 = arith.mulf %313, %337 : vector<16x8xf32>
    %340 = arith.mulf %339, %300 : vector<16x8xf32>
    %341 = arith.addf %338, %340 : vector<16x8xf32>
    %342 = arith.mulf %321, %337 : vector<16x8xf32>
    %343 = arith.mulf %342, %301 : vector<16x8xf32>
    %344 = arith.addf %341, %343 : vector<16x8xf32>
    %345 = arith.mulf %329, %337 : vector<16x8xf32>
    %346 = arith.mulf %345, %302 : vector<16x8xf32>
    %347 = arith.addf %344, %346 : vector<16x8xf32>
    %348 = arith.cmpf one, %347, %347 : vector<16x8xf32>
    %cst_138 = arith.constant 0.000000e+00 : f32
    %349 = vector.broadcast %cst_138 : f32 to vector<16x8xf32>
    %350 = arith.select %348, %349, %347 : vector<16x8xi1>, vector<16x8xf32>
    %c48 = arith.constant 48 : index
    %c0_139 = arith.constant 0 : index
    %351 = vector.load %arg14[%c48, %c0_139] : memref<64x8xf32, #tpu.memory_space<vmem>>, vector<16x8xf32>
    tpu.vector_store %arg14[%c48, %c0_139], %350 {strides = array<i32>} : memref<64x8xf32, #tpu.memory_space<vmem>>, vector<16x8xf32>,
    return
  }
}

</mosaic_0001>

<bundles_post_ra>
// kernel: tpu_custom_call.1
= control target key start
LH: loop header
LB: loop body
LE: loop exit
PB: predicated region body
PF: predicated region fallthrough
CT: control target
= control target key end

     0   :  { %v59_v24 = vlaneseq  ;;  %s3594_s0 = inlined_call_operand.vmem [shape: f32[9,1024], index: 0, kind: input, shape index: {}]   ;;  %s3595_s1 = inlined_call_operand.vmem [shape: f32[2,1024], index: 1, kind: input, shape index: {}]   ;;  %s3596_s2 = inlined_call_operand.vmem [shape: bf16[1024,32], index: 2, kind: input, shape index: {}]   ;;  %s3597_s3 = inlined_call_operand.vmem [shape: f32[32,64], index: 3, kind: input, shape index: {}]   ;;  %s3598_s4 = inlined_call_operand.vmem [shape: f32[7,32], index: 4, kind: input, shape index: {}]   ;;  %s3599_s5 = inlined_call_operand.vmem [shape: f32[8,32], index: 5, kind: input, shape index: {}]   ;;  %s3600_s6 = inlined_call_operand.vmem [shape: f32[16,56], index: 6, kind: input, shape index: {}]   ;;  %s3601_s7 = inlined_call_operand.vmem [shape: bf16[56,64], index: 7, kind: input, shape index: {}]   ;;  %s3602_s8 = inlined_call_operand.vmem [shape: f32[1,64], index: 8, kind: input, shape index: {}]   ;;  %s3603_s9 = inlined_call_operand.vmem [shape: f32[32,8], index: 9, kind: input, shape index: {}]   ;;  %s3604_s10 = inlined_call_operand.vmem [shape: f32[8,32], index: 10, kind: input, shape index: {}]   ;;  %s3605_s11 = inlined_call_operand.vmem [shape: f32[1,8], index: 11, kind: input, shape index: {}]   ;;  %s3606_s12 = inlined_call_operand.hbm [shape: f32[8,32], index: 12, kind: output, shape index: {0}]   ;;  %s3607_s13 = inlined_call_operand.vmem [shape: f32[48,32], index: 13, kind: output, shape index: {1}]   ;;  %s3608_s14 = inlined_call_operand.vmem [shape: f32[64,8], index: 14, kind: output, shape index: {2}]  }
   0x1   :  { %v2424_v0 = vld [vmem:[%s3596_s2 + $0x40] sm:$0xff]   ;;  %v2428_v4 = vld [vmem:[%s3596_s2 + $0x48] sm:$0xff]   ;;  %v2432_v8 = vld [vmem:[%s3596_s2 + $0x50] sm:$0xff]  }
   0x2   :  { %v2425_v1 = vld [vmem:[%s3596_s2 + $0xc0] sm:$0xff]   ;;  %2247 = vmatprep.subr.bf16.mxu0 %v2424_v0  ;;  %v2429_v5 = vld [vmem:[%s3596_s2 + $0xc8] sm:$0xff]   ;;  %v2433_v9 = vld [vmem:[%s3596_s2 + $0xd0] sm:$0xff]   ;;  %v2825_v29 = vshrl.u32 %v59_v24, 7 }
   0x3   :  { %v2426_v2 = vld [vmem:[%s3596_s2] sm:$0xff]   ;;  %2269 = vmatprep.subr.bf16.mxu1 %v2425_v1  ;;  %v2430_v6 = vld [vmem:[%s3596_s2 + $0x8] sm:$0xff]   ;;  %v2434_v10 = vld [vmem:[%s3596_s2 + $0x10] sm:$0xff]  }
   0x4   :  { %v2427_v3 = vld [vmem:[%s3596_s2 + $0x80] sm:$0xff]   ;;  %2248 = vmatpush3.bf16.msra.mxu0 %v2426_v2  ;;  %v2431_v7 = vld [vmem:[%s3596_s2 + $0x88] sm:$0xff]   ;;  %v2435_v11 = vld [vmem:[%s3596_s2 + $0x90] sm:$0xff]   ;;  %v2840_v34 = vsub.s32 1, %v2825_v29  ;;  %v2846_v36 = vsub.s32 3, %v2825_v29  ;;  %v2849_v37 = vsub.s32 0, %v2825_v29 }
   0x5   :  { %2270 = vmatpush3.bf16.msra.mxu1 %v2427_v3  ;;  %2249 = vmatprep.subr.bf16.mxu0 %v2428_v4  ;;  %v2436_v12 = vld [vmem:[%s3596_s2 + $0x58] sm:$0xff]   ;;  %v2440_v16 = vld [vmem:[%s3596_s2 + $0x60] sm:$0xff]   ;;  %v2444_v20 = vld [vmem:[%s3596_s2 + $0x68] sm:$0xff]   ;;  %v2852_v38 = vsub.s32 2, %v2825_v29  ;;  %v2872_v45 = vsub.s32 6, %v2825_v29 }
   0x6   :  { %2271 = vmatprep.subr.bf16.mxu1 %v2429_v5  ;;  %v2437_v13 = vld [vmem:[%s3596_s2 + $0xd8] sm:$0xff]   ;;  %v2441_v17 = vld [vmem:[%s3596_s2 + $0xe0] sm:$0xff]   ;;  %v2445_v21 = vld [vmem:[%s3596_s2 + $0xe8] sm:$0xff]  }
   0x7   :  { %v2438_v14 = vld [vmem:[%s3596_s2 + $0x18] sm:$0xff]   ;;  %v2442_v18 = vld [vmem:[%s3596_s2 + $0x20] sm:$0xff]   ;;  %v2446_v22 = vld [vmem:[%s3596_s2 + $0x28] sm:$0xff]  }
   0x8   :  { %2250 = vmatpush3.bf16.msra.mxu0 %v2430_v6  ;;  %v2439_v15 = vld [vmem:[%s3596_s2 + $0x98] sm:$0xff]   ;;  %v2443_v19 = vld [vmem:[%s3596_s2 + $0xa0] sm:$0xff]   ;;  %v2447_v23 = vld [vmem:[%s3596_s2 + $0xa8] sm:$0xff]  }
   0x9   :  { %2272 = vmatpush3.bf16.msra.mxu1 %v2431_v7  ;;  %2251 = vmatprep.subr.bf16.mxu0 %v2432_v8  ;;  %v2448_v25 = vld [vmem:[%s3596_s2 + $0x70] sm:$0xff]   ;;  %v2452_v30 = vld [vmem:[%s3596_s2 + $0x78] sm:$0xff]   ;;  %v47_v39 = vld [vmem:[%s3594_s0 + $0x8] sm:$0xff] }
   0xa   :  { %2273 = vmatprep.subr.bf16.mxu1 %v2433_v9  ;;  %v2449_v26 = vld [vmem:[%s3596_s2 + $0xf0] sm:$0xff]   ;;  %v2453_v31 = vld [vmem:[%s3596_s2 + $0xf8] sm:$0xff]   ;;  %v2456_v43 = vld [vmem:[%s3596_s2 + $0x140] sm:$0xff]  }
   0xb   :  { %v2450_v27 = vld [vmem:[%s3596_s2 + $0x30] sm:$0xff]   ;;  %v2454_v32 = vld [vmem:[%s3596_s2 + $0x38] sm:$0xff]   ;;  %v2457_v44 = vld [vmem:[%s3596_s2 + $0x1c0] sm:$0xff]  }
   0xc   :  { %2252 = vmatpush3.bf16.msra.mxu0 %v2434_v10  ;;  %v2451_v28 = vld [vmem:[%s3596_s2 + $0xb0] sm:$0xff]   ;;  %v2455_v33 = vld [vmem:[%s3596_s2 + $0xb8] sm:$0xff]   ;;  %v46_v48 = vld [vmem:[%s3594_s0] sm:$0xff] }
   0xd   :  { %2274 = vmatpush3.bf16.msra.mxu1 %v2435_v11  ;;  %2253 = vmatprep.subr.bf16.mxu0 %v2436_v12  ;;  %v2157_v35 = vld [vmem:[%s3594_s0 + $0x40] ss:$8 sm:$0xf] }
   0xe   :  { %2275 = vmatprep.subr.bf16.mxu1 %v2437_v13  ;;  %v2158_v40 = vld [vmem:[%s3594_s0 + $0x40] ss:$8 sm:$0xf0] }
   0xf   :  { %v49_v41 = vld [vmem:[%s3594_s0 + $0x18] sm:$0xff]  ;;  %v2863_v42 = vor.u32 %v2158_v40, %v2157_v35  ;;  %v48_v50 = vld [vmem:[%s3594_s0 + $0x10] sm:$0xff]  ;;  %v2893_v53 = vld [vmem:[%s3595_s1] ss:$2 sm:$0xff] }
  0x10   :  { %2254 = vmatpush3.bf16.msra.mxu0 %v2438_v14  ;;  %v306_v58 = vrot.slane %v2893_v53, %v2872_v45 }
  0x11   :  { %2276 = vmatpush3.bf16.msra.mxu1 %v2439_v15  ;;  %2255 = vmatprep.subr.bf16.mxu0 %v2440_v16  ;;  %v66_v46 = vrot.slane %v2863_v42, %v2840_v34  ;;  %v74_v47 = vrot.slane %v2863_v42, %v2846_v36  ;;  %v62_v49 = vrot.slane %v2863_v42, %v2849_v37 }
  0x12   :  { %2277 = vmatprep.subr.bf16.mxu1 %v2441_v17  ;;  %v70_v51 = vrot.slane %v2863_v42, %v2852_v38  ;;  %v86_v57 = vrot.slane %v2863_v42, %v2872_v45 }
  0x13   :  { %v2888_v52 = vadd.f32 %v66_v46, %v47_v39  ;;  %v2895_v54 = vadd.f32 %v74_v47, %v49_v41  ;;  %v2897_v55 = vadd.f32 %v62_v49, %v46_v48 }
  0x14   :  { %2256 = vmatpush3.bf16.msra.mxu0 %v2442_v18  ;;  %v2899_v56 = vadd.f32 %v70_v51, %v48_v50 }
  0x15   :  { %2278 = vmatpush3.bf16.msra.mxu1 %v2443_v19  ;;  %2257 = vmatprep.subr.bf16.mxu0 %v2444_v20  ;;  %v116_v59 = vrot.slane %v2888_v52, 4  ;;  %v167_v60 = vmul.f32 %v2888_v52, %v2888_v52  ;;  %v128_v61 = vrot.slane %v2895_v54, 4  ;;  %v169_v62 = vmul.f32 %v2895_v54, %v2895_v54 }
  0x16   :  { %2279 = vmatprep.subr.bf16.mxu1 %v2445_v21  ;;  %v110_v63 = vrot.slane %v2897_v55, 4  ;;  %v166_v0 = vmul.f32 %v2897_v55, %v2897_v55  ;;  %v122_v1 = vrot.slane %v2899_v56, 4  ;;  %v168_v2 = vmul.f32 %v2899_v56, %v2899_v56 }
  0x17   :  { %v117_v3 = vadd.f32 %v116_v59, %v2888_v52  ;;  %v180_v4 = vrot.slane %v167_v60, 4  ;;  %v129_v5 = vadd.f32 %v128_v61, %v2895_v54  ;;  %v192_v6 = vrot.slane %v169_v62, 4 }
  0x18   :  { %2258 = vmatpush3.bf16.msra.mxu0 %v2446_v22  ;;  %v111_v7 = vadd.f32 %v110_v63, %v2897_v55  ;;  %v174_v8 = vrot.slane %v166_v0, 4  ;;  %v123_v9 = vadd.f32 %v122_v1, %v2899_v56  ;;  %v186_v10 = vrot.slane %v168_v2, 4  ;;  %v2924_v1 = vld [vmem:[%s3595_s1 + $0x1] ss:$2 sm:$0xff] }
  0x19   :  { %2280 = vmatpush3.bf16.msra.mxu1 %v2447_v23  ;;  %2259 = vmatprep.subr.bf16.mxu0 %v2448_v25  ;;  %v118_v11 = vrot.slane %v117_v3, 2  ;;  %v181_v12 = vadd.f32 %v180_v4, %v167_v60  ;;  %v130_v13 = vrot.slane %v129_v5, 2  ;;  %v193_v14 = vadd.f32 %v192_v6, %v169_v62 }
  0x1a   :  { %2281 = vmatprep.subr.bf16.mxu1 %v2449_v26  ;;  %v112_v15 = vrot.slane %v111_v7, 2  ;;  %v175_v16 = vadd.f32 %v174_v8, %v166_v0  ;;  %v124_v17 = vrot.slane %v123_v9, 2  ;;  %v187_v18 = vadd.f32 %v186_v10, %v168_v2 }
  0x1b   :  { %v119_v19 = vadd.f32 %v118_v11, %v117_v3  ;;  %v182_v20 = vrot.slane %v181_v12, 2  ;;  %v131_v21 = vadd.f32 %v130_v13, %v129_v5  ;;  %v194_v22 = vrot.slane %v193_v14, 2 }
  0x1c   :  { %2260 = vmatpush3.bf16.msra.mxu0 %v2450_v27  ;;  %v113_v23 = vadd.f32 %v112_v15, %v111_v7  ;;  %v176_v24 = vrot.slane %v175_v16, 2  ;;  %v125_v25 = vadd.f32 %v124_v17, %v123_v9  ;;  %v188_v26 = vrot.slane %v187_v18, 2 }
  0x1d   :  { %2282 = vmatpush3.bf16.msra.mxu1 %v2451_v28  ;;  %2261 = vmatprep.subr.bf16.mxu0 %v2452_v30  ;;  %v120_v27 = vrot.slane %v119_v19, 1  ;;  %v183_v28 = vadd.f32 %v182_v20, %v181_v12  ;;  %v132_v30 = vrot.slane %v131_v21, 1  ;;  %v355_v13 = vrot.slane %v2924_v1, %v2872_v45 }
  0x1e   :  { %2283 = vmatprep.subr.bf16.mxu1 %v2453_v31  ;;  %v195_v31 = vadd.f32 %v194_v22, %v193_v14  ;;  %v126_v35 = vrot.slane %v125_v25, 1  ;;  %v189_v39 = vadd.f32 %v188_v26, %v187_v18  ;;  %v2932_v20 = vsub.s32 7, %v2825_v29 }
  0x1f   :  { %v121_v40 = vadd.f32 %v120_v27, %v119_v19  ;;  %v184_v41 = vrot.slane %v183_v28, 1  ;;  %v2929_v19 = vsub.s32 5, %v2825_v29 }
  0x20   :  { %2262 = vmatpush3.bf16.msra.mxu0 %v2454_v32  ;;  %v114_v32 = vrot.slane %v113_v23, 1  ;;  %v127_v48 = vadd.f32 %v126_v35, %v125_v25  ;;  %v190_v49 = vrot.slane %v189_v39, 1  ;;  %v90_v26 = vrot.slane %v2863_v42, %v2932_v20 }
  0x21   :  { %2284 = vmatpush3.bf16.msra.mxu1 %v2455_v33  ;;  %2291 = vmatprep.subr.bf16.mxu0 %v2456_v43  ;;  %v177_v33 = vadd.f32 %v176_v24, %v175_v16  ;;  %v133_v43 = vadd.f32 %v132_v30, %v131_v21  ;;  %v159_v50 = vmul.f32 0.125, %v121_v40  ;;  %v185_v51 = vadd.f32 %v184_v41, %v183_v28 }
  0x22   :  { %2313 = vmatprep.subr.bf16.mxu1 %v2457_v44  ;;  %v196_v44 = vrot.slane %v195_v31, 1  ;;  %v115_v46 = vadd.f32 %v114_v32, %v113_v23  ;;  %v160_v63 = vmul.f32 0.125, %v127_v48  ;;  %v191_v0 = vadd.f32 %v190_v49, %v189_v39 }
  0x23   :  { %v178_v47 = vrot.slane %v177_v33, 1  ;;  %v161_v59 = vmul.f32 0.125, %v133_v43  ;;  %v223_v2 = vmul.f32 0.125, %v185_v51  ;;  %v231_v3 = vmul.f32 %v159_v50, %v159_v50 }
  0x24   :  { %v197_v60 = vadd.f32 %v196_v44, %v195_v31  ;;  %v158_v61 = vmul.f32 0.125, %v115_v46  ;;  %v224_v9 = vmul.f32 0.125, %v191_v0  ;;  %v232_v10 = vmul.f32 %v160_v63, %v160_v63 }
  0x25   :  { %v179_v62 = vadd.f32 %v178_v47, %v177_v33  ;;  %v233_v5 = vmul.f32 %v161_v59, %v161_v59  ;;  %v239_v8 = vsub.f32 %v223_v2, %v231_v3  ;;  %v247_v21 = vsub.f32 %v2888_v52, %v159_v50  ;;  %v51_v52 = vld [vmem:[%s3594_s0 + $0x28] sm:$0xff] }
  0x26   :  { %v225_v4 = vmul.f32 0.125, %v197_v60  ;;  %v230_v7 = vmul.f32 %v158_v61, %v158_v61  ;;  %v240_v15 = vsub.f32 %v224_v9, %v232_v10  ;;  %v82_v22 = vrot.slane %v2863_v42, %v2929_v19 }
  0x27   :  { %v222_v6 = vmul.f32 0.125, %v179_v62  ;;  %v255_v14 = vadd.f32 1e-05, %v239_v8  ;;  %v249_v23 = vsub.f32 %v2895_v54, %v161_v59  ;;  %v286_v24 = vrot.slane %v2893_v53, %v2840_v34 }
  0x28   :  { %v241_v11 = vsub.f32 %v225_v4, %v233_v5  ;;  %v256_v18 = vadd.f32 1e-05, %v240_v15  ;;  %v246_v25 = vsub.f32 %v2897_v55, %v158_v61  ;;  %v294_v28 = vrot.slane %v2893_v53, %v2846_v36 }
  0x29   :  { %v238_v12 = vsub.f32 %v222_v6, %v230_v7  ;;  %2492 = vrsqrt.f32 %v255_v14  ;;  %v248_v30 = vsub.f32 %v2899_v56, %v160_v63  ;;  %v2950_v54 = vsub.s32 4, %v2825_v29  ;;  %v53_v56 = vld [vmem:[%s3594_s0 + $0x38] sm:$0xff] }
  0x2a   :  { %v257_v16 = vadd.f32 1e-05, %v241_v11  ;;  %v335_v55 = vrot.slane %v2924_v1, %v2840_v34  ;;  %v282_v33 = vrot.slane %v2893_v53, %v2849_v37  ;;  %v2956_v35 = vadd.f32 %v82_v22, %v51_v52 }
  0x2b   :  { %v254_v17 = vadd.f32 1e-05, %v238_v12  ;;  %v343_v29 = vrot.slane %v2924_v1, %v2846_v36  ;;  %v331_v41 = vrot.slane %v2924_v1, %v2849_v37  ;;  %v290_v34 = vrot.slane %v2893_v53, %v2852_v38 }
  0x2c   :  { %2494 = vrsqrt.f32 %v257_v16  ;;  %v140_v47 = vrot.slane %v2956_v35, 4  ;;  %v2968_v48 = vadd.f32 %v90_v26, %v53_v56  ;;  %v171_v51 = vmul.f32 %v2956_v35, %v2956_v35 }
  0x2d   :  { %2496 = vrsqrt.f32 %v254_v17  ;;  %v339_v60 = vrot.slane %v2924_v1, %v2852_v38 }
  0x2e   :  { %2498 = vrsqrt.f32 %v256_v18 }
  0x33   :  { %v2493_v27 = vpop.eup %2492 }
  0x34   :  { %v271_v32 = vmul.f32 %v2493_v27, %v247_v21 }
  0x36   :  { %v2495_v31 = vpop.eup %2494  ;;  %v320_v44 = vmul.f32 %v286_v24, %v271_v32 }
  0x37   :  { %v2497_v39 = vpop.eup %2496  ;;  %v273_v40 = vmul.f32 %v2495_v31, %v249_v23 }
  0x38   :  { %v2499_v43 = vpop.eup %2498  ;;  %v270_v46 = vmul.f32 %v2497_v39, %v246_v25  ;;  %v369_v59 = vadd.f32 %v335_v55, %v320_v44 }
  0x39   :  { %v322_v49 = vmul.f32 %v294_v28, %v273_v40  ;;  %v272_v50 = vmul.f32 %v2499_v43, %v248_v30 }
  0x3a   :  { %v319_v36 = vmul.f32 %v282_v33, %v270_v46 }
  0x3b   :  { %20 = vsyncpa [#allocation3], 0  ;;  %v371_v61 = vadd.f32 %v343_v29, %v322_v49  ;;  %v321_v62 = vmul.f32 %v290_v34, %v272_v50  ;;  %v141_v63 = vadd.f32 %v140_v47, %v2956_v35  ;;  %v78_v0 = vrot.slane %v2863_v42, %v2950_v54  ;;  %v50_v6 = vld [vmem:[%s3594_s0 + $0x20] sm:$0xff]  ;;  %v52_v38 = vld [vmem:[%s3594_s0 + $0x30] sm:$0xff]  ;;  %s2662_s16 = smov 32   ;;  %s2663_s21 = smov 96  }
  0x3c   :  { %v385_v2 = vmul.f32 0.70710677, %v369_v59  ;;  %v368_v3 = vadd.f32 %v331_v41, %v319_v36  ;;  %v302_v4 = vrot.slane %v2893_v53, %v2929_v19  ;;  %v152_v5 = vrot.slane %v2968_v48, 4  ;;  %v2480_v45 = vld [vmem:[%s3596_s2 + $0x170] sm:$0xff]  }
  0x3d   :  { %v2986_v7 = vmul.f32 0.70710677, %v371_v61  ;;  %v204_v8 = vrot.slane %v171_v51, 4  ;;  %v351_v9 = vrot.slane %v2924_v1, %v2929_v19  ;;  %v310_v10 = vrot.slane %v2893_v53, %v2932_v20 }
  0x3e   :  { %v409_v11 = vand.u32 2147483647, %v385_v2  ;;  %v2992_v12 = vmul.f32 0.70710677, %v368_v3  ;;  %v2994_v14 = vadd.f32 %v339_v60, %v321_v62  ;;  %v359_v15 = vrot.slane %v2924_v1, %v2932_v20 }
  0x3f   :  { %v411_v16 = vand.u32 2147483647, %v2986_v7  ;;  %v142_v17 = vrot.slane %v141_v63, 2  ;;  %v2999_v18 = vadd.f32 %v78_v0, %v50_v6  ;;  %v3004_v21 = vadd.f32 %v86_v57, %v52_v38 }
  0x40   :  { %v417_v22 = vmul.f32 0.3275911, %v409_v11  ;;  %v521_v23 = vsub.f32 0.0, %v409_v11  ;;  %v153_v24 = vadd.f32 %v152_v5, %v2968_v48  ;;  %v173_v25 = vmul.f32 %v2968_v48, %v2968_v48 }
  0x41   :  { %v419_v26 = vmul.f32 0.3275911, %v411_v16  ;;  %v523_v27 = vsub.f32 0.0, %v411_v16  ;;  %v408_v28 = vand.u32 2147483647, %v2992_v12  ;;  %v205_v30 = vadd.f32 %v204_v8, %v171_v51 }
  0x42   :  { %vm393_vm0 = vcmp.ge.f32.partialorder %v385_v2, 0.0  ;;  %v425_v52 = vadd.f32 1.0, %v417_v22  ;;  %v529_v31 = vmul.f32 %v521_v23, %v409_v11  ;;  %v3011_v32 = vmul.f32 0.70710677, %v2994_v14 }
  0x43   :  { %v427_v42 = vadd.f32 1.0, %v419_v26  ;;  %v416_v57 = vmul.f32 0.3275911, %v408_v28  ;;  %v520_v55 = vsub.f32 0.0, %v408_v28  ;;  %v143_v33 = vadd.f32 %v142_v17, %v141_v63 }
  0x44   :  { %2500 = vrcp.f32 %v425_v52  ;;  %v538_v56 = vmul.f32 1.442695, %v529_v31  ;;  %v531_v39 = vmul.f32 %v523_v27, %v411_v16  ;;  %v410_v40 = vand.u32 2147483647, %v3011_v32 }
  0x45   :  { %v3014_v29 = vmul.f32 0.5, %v369_v59  ;;  %2502 = vrcp.f32 %v427_v42  ;;  %v424_v41 = vadd.f32 1.0, %v416_v57  ;;  %v216_v34 = vrot.slane %v173_v25, 4 }
  0x46   :  { %v3016_v43 = vmul.f32 0.5, %v371_v61  ;;  %v3018_v44 = vmul.f32 0.5, %v368_v3  ;;  %v528_v46 = vmul.f32 %v520_v55, %v408_v28  ;;  %v418_v47 = vmul.f32 0.3275911, %v410_v40 }
  0x47   :  { %v2658_v49 = vmov -1.0   ;;  %2504 = vpow2.f32 %v538_v56  ;;  %v144_v51 = vrot.slane %v143_v33, 1  ;;  %v206_v36 = vrot.slane %v205_v30, 2 }
  0x48   :  { %v3022_v50 = vsel %vm393_vm0, 1.0, %v2658_v49  ;;  %v542_v60 = vmul.f32 1.442695, %v531_v39  ;;  %2506 = vrcp.f32 %v424_v41  ;;  %v426_v59 = vadd.f32 1.0, %v418_v47 }
  0x49   :  { %v154_v62 = vrot.slane %v153_v24, 2  ;;  %v522_v63 = vsub.f32 0.0, %v410_v40  ;;  %v145_v0 = vadd.f32 %v144_v51, %v143_v33  ;;  %v207_v61 = vadd.f32 %v206_v36, %v205_v30 }
  0x4a   :  { %v217_v5 = vadd.f32 %v216_v34, %v173_v25  ;;  %v536_v3 = vmul.f32 1.442695, %v528_v46  ;;  %2508 = vrcp.f32 %v426_v59  ;;  %v134_v38 = vrot.slane %v2999_v18, 4 }
  0x4b   :  { %v155_v6 = vadd.f32 %v154_v62, %v153_v24  ;;  %v3025_v8 = vmul.f32 0.125, %v145_v0  ;;  %v208_v2 = vrot.slane %v207_v61, 1  ;;  %v170_v16 = vmul.f32 %v2999_v18, %v2999_v18 }
  0x4c   :  { %v218_v11 = vrot.slane %v217_v5, 2  ;;  %2510 = vpow2.f32 %v542_v60  ;;  %v135_v22 = vadd.f32 %v134_v38, %v2999_v18  ;;  %v146_v23 = vrot.slane %v3004_v21, 4 }
  0x4d   :  { %v156_v17 = vrot.slane %v155_v6, 1  ;;  %v530_v26 = vmul.f32 %v522_v63, %v410_v40  ;;  %v209_v25 = vadd.f32 %v208_v2, %v207_v61  ;;  %v235_v24 = vmul.f32 %v3025_v8, %v3025_v8 }
  0x4e   :  { %v219_v27 = vadd.f32 %v218_v11, %v217_v5  ;;  %v3033_v28 = vpop.eup %2500  ;;  %v136_v52 = vrot.slane %v135_v22, 2  ;;  %v198_v31 = vrot.slane %v170_v16, 4  ;;  %v147_v42 = vadd.f32 %v146_v23, %v3004_v21 }
  0x4f   :  { %v157_v30 = vadd.f32 %v156_v17, %v155_v6  ;;  %v3036_v57 = vpop.eup %2502  ;;  %v449_v55 = vmul.f32 1.0614054, %v3033_v28  ;;  %2512 = vpow2.f32 %v536_v3  ;;  %v227_v33 = vmul.f32 0.125, %v209_v25 }
  0x50   :  { %v220_v56 = vrot.slane %v219_v27, 1  ;;  %v451_v39 = vmul.f32 1.0614054, %v3036_v57  ;;  %v137_v41 = vadd.f32 %v136_v52, %v135_v22  ;;  %v199_v34 = vadd.f32 %v198_v31, %v170_v16 }
  0x51   :  { %v3040_v40 = vmul.f32 0.125, %v157_v30  ;;  %v3042_v46 = vpop.eup %2504  ;;  %v457_v47 = vadd.f32 -1.4531521, %v449_v55  ;;  %vm395_vm1 = vcmp.ge.f32.partialorder %v2986_v7, 0.0  ;;  %v243_v51 = vsub.f32 %v227_v33, %v235_v24 }
  0x52   :  { %v221_v36 = vadd.f32 %v220_v56, %v219_v27  ;;  %v148_v60 = vrot.slane %v147_v42, 2  ;;  %v3045_v59 = vpop.eup %2506  ;;  %v459_v62 = vadd.f32 -1.4531521, %v451_v39  ;;  %v540_v63 = vmul.f32 1.442695, %v530_v26 }
  0x53   :  { %v237_v0 = vmul.f32 %v3040_v40, %v3040_v40  ;;  %v138_v61 = vrot.slane %v137_v41, 1  ;;  %v465_v5 = vmul.f32 %v3033_v28, %v457_v47  ;;  %v448_v3 = vmul.f32 1.0614054, %v3045_v59 }
  0x54   :  { %v259_v6 = vadd.f32 1e-05, %v243_v51  ;;  %v229_v38 = vmul.f32 0.125, %v221_v36  ;;  %v3051_v2 = vpop.eup %2508  ;;  %v467_v11 = vmul.f32 %v3036_v57, %v459_v62  ;;  %v200_v17 = vrot.slane %v199_v34, 2 }
  0x55   :  { %v139_v16 = vadd.f32 %v138_v61, %v137_v41  ;;  %v149_v22 = vadd.f32 %v148_v60, %v147_v42  ;;  %v473_v23 = vadd.f32 1.4214138, %v465_v5  ;;  %v456_v25 = vadd.f32 -1.4531521, %v448_v3 }
  0x56   :  { %v450_v26 = vmul.f32 1.0614054, %v3051_v2  ;;  %2514 = vrsqrt.f32 %v259_v6  ;;  %v2511_v24 = vpop.eup %2510  ;;  %v475_v27 = vadd.f32 1.4214138, %v467_v11  ;;  %v245_v30 = vsub.f32 %v229_v38, %v237_v0 }
  0x57   :  { %v3055_v52 = vmul.f32 0.125, %v139_v16  ;;  %v201_v31 = vadd.f32 %v200_v17, %v199_v34  ;;  %v481_v55 = vmul.f32 %v3033_v28, %v473_v23  ;;  %v464_v33 = vmul.f32 %v3045_v59, %v456_v25 }
  0x58   :  { %v458_v56 = vadd.f32 -1.4531521, %v450_v26  ;;  %v172_v39 = vmul.f32 %v3004_v21, %v3004_v21  ;;  %v483_v42 = vmul.f32 %v3036_v57, %v475_v27  ;;  %2516 = vpow2.f32 %v540_v63 }
  0x59   :  { %v261_v41 = vadd.f32 1e-05, %v245_v30  ;;  %v202_v47 = vrot.slane %v201_v31, 1  ;;  %v2513_v51 = vpop.eup %2512  ;;  %v489_v36 = vadd.f32 -0.28449672, %v481_v55  ;;  %v150_v0 = vrot.slane %v149_v22, 1 }
  0x5a   :  { %v472_v60 = vadd.f32 1.4214138, %v464_v33  ;;  %v466_v62 = vmul.f32 %v3051_v2, %v458_v56  ;;  %v491_v34 = vadd.f32 -0.28449672, %v483_v42  ;;  %v234_v5 = vmul.f32 %v3055_v52, %v3055_v52 }
  0x5b   :  { %2518 = vrsqrt.f32 %v261_v41  ;;  %v203_v61 = vadd.f32 %v202_v47, %v201_v31  ;;  %v497_v3 = vmul.f32 %v3033_v28, %v489_v36  ;;  %v210_v63 = vrot.slane %v172_v39, 4 }
  0x5c   :  { %v480_v6 = vmul.f32 %v3045_v59, %v472_v60  ;;  %v474_v38 = vadd.f32 1.4214138, %v466_v62  ;;  %v403_v11 = vsel %vm395_vm1, 1.0, %v2658_v49  ;;  %v499_v16 = vmul.f32 %v3036_v57, %v491_v34 }
  0x5d   :  { %v251_v17 = vsub.f32 %v2956_v35, %v3025_v8  ;;  %v226_v23 = vmul.f32 0.125, %v203_v61  ;;  %v505_v25 = vadd.f32 0.2548296, %v497_v3  ;;  %v211_v30 = vadd.f32 %v210_v63, %v172_v39 }
  0x5e   :  { %v488_v26 = vadd.f32 -0.28449672, %v480_v6  ;;  %v482_v27 = vmul.f32 %v3051_v2, %v474_v38  ;;  %v507_v31 = vadd.f32 0.2548296, %v499_v16  ;;  %vm392_vm2 = vcmp.ge.f32.partialorder %v2992_v12, 0.0 }
  0x5f   :  { %v242_v55 = vsub.f32 %v226_v23, %v234_v5  ;;  %v151_v33 = vadd.f32 %v150_v0, %v149_v22  ;;  %v513_v7 = vmul.f32 %v3033_v28, %v505_v25  ;;  %v212_v47 = vrot.slane %v211_v30, 2 }
  0x60   :  { %v2515_v56 = vpop.eup %2514  ;;  %v496_v42 = vmul.f32 %v3045_v59, %v488_v26  ;;  %v490_v41 = vadd.f32 -0.28449672, %v482_v27  ;;  %v515_v35 = vmul.f32 %v3036_v57, %v507_v31  ;;  %v253_v36 = vsub.f32 %v2968_v48, %v3040_v40 }
  0x61   :  { %v275_v8 = vmul.f32 %v2515_v56, %v251_v17  ;;  %v258_v60 = vadd.f32 1e-05, %v242_v55  ;;  %v553_v39 = vmul.f32 %v3042_v46, %v513_v7  ;;  %v213_v22 = vadd.f32 %v212_v47, %v211_v30 }
  0x62   :  { %v504_v62 = vadd.f32 0.2548296, %v496_v42  ;;  %v498_v34 = vmul.f32 %v3051_v2, %v490_v41  ;;  %v2517_v0 = vpop.eup %2516  ;;  %v555_v61 = vmul.f32 %v2511_v24, %v515_v35  ;;  %v3085_v5 = vmul.f32 0.125, %v151_v33 }
  0x63   :  { %v324_v28 = vmul.f32 %v302_v4, %v275_v8  ;;  %2520 = vrsqrt.f32 %v258_v60  ;;  %v561_v57 = vsub.f32 1.0, %v553_v39  ;;  %v214_v40 = vrot.slane %v213_v22, 1 }
  0x64   :  { %v512_v3 = vmul.f32 %v3045_v59, %v504_v62  ;;  %v506_v48 = vadd.f32 0.2548296, %v498_v34  ;;  %v563_v46 = vsub.f32 1.0, %v555_v61  ;;  %v400_v38 = vsel %vm392_vm2, 1.0, %v2658_v49 }
  0x65   :  { %v2519_v6 = vpop.eup %2518  ;;  %vm394_vm3 = vcmp.ge.f32.partialorder %v3011_v32, 0.0  ;;  %v3095_v4 = vadd.f32 %v351_v9, %v324_v28  ;;  %v569_v24 = vmul.f32 %v561_v57, %v3022_v50  ;;  %v215_v25 = vadd.f32 %v214_v40, %v213_v22 }
  0x66   :  { %v552_v63 = vmul.f32 %v2513_v51, %v512_v3  ;;  %v514_v59 = vmul.f32 %v3051_v2, %v506_v48  ;;  %v277_v16 = vmul.f32 %v2519_v6, %v253_v36  ;;  %v571_v17 = vmul.f32 %v563_v46, %v403_v11  ;;  %v2462_v3 = vld [vmem:[%s3596_s2 + $0x108] sm:$0xff]   ;;  %v2464_v6 = vld [vmem:[%s3596_s2 + $0x150] sm:$0xff]  }
  0x67   :  { %v3100_v23 = vmul.f32 0.70710677, %v3095_v4  ;;  %v236_v12 = vmul.f32 %v3085_v5, %v3085_v5  ;;  %v577_v32 = vadd.f32 1.0, %v569_v24  ;;  %v402_v50 = vsel %vm394_vm3, 1.0, %v2658_v49 }
  0x68   :  { %v560_v26 = vsub.f32 1.0, %v552_v63  ;;  %v554_v27 = vmul.f32 %v2517_v0, %v514_v59  ;;  %v326_v19 = vmul.f32 %v310_v10, %v277_v16  ;;  %v579_v9 = vadd.f32 1.0, %v571_v17  ;;  %v2459_v0 = vld [vmem:[%s3596_s2 + $0x180] sm:$0xff]   ;;  %v2465_v63 = vld [vmem:[%s3596_s2 + $0x1d0] sm:$0xff]  }
  0x69   :  { %v413_v2 = vand.u32 2147483647, %v3100_v23  ;;  %v228_v51 = vmul.f32 0.125, %v215_v25  ;;  %v585_v11 = vmul.f32 %v577_v32, %v3014_v29  ;;  %v250_v55 = vsub.f32 %v2999_v18, %v3055_v52  ;;  %v2466_v59 = vld [vmem:[%s3596_s2 + $0x110] sm:$0xff]   ;;  %v2468_v25 = vld [vmem:[%s3596_s2 + $0x158] sm:$0xff]  }
  0x6a   :  { %v568_v30 = vmul.f32 %v560_v26, %v400_v38  ;;  %v562_v31 = vsub.f32 1.0, %v554_v27  ;;  %v587_v33 = vmul.f32 %v579_v9, %v3016_v43  ;;  %v378_v56 = vmul.f32 0.5, %v2994_v14  ;;  %v2463_v38 = vld [vmem:[%s3596_s2 + $0x188] sm:$0xff]   ;;  %v2467_v32 = vld [vmem:[%s3596_s2 + $0x190] sm:$0xff]  }
  0x6b   :  { %v421_v7 = vmul.f32 0.3275911, %v413_v2  ;;  %v3117_v10 = vadd.f32 %v359_v15, %v326_v19  ;;  %v593_v42 = vpack.c.bf16 %v585_v11, %v585_v11  ;;  %v244_v35 = vsub.f32 %v228_v51, %v236_v12  ;;  %v2458_v15 = vld [vmem:[%s3596_s2 + $0x100] sm:$0xff]   ;;  %v2469_v19 = vld [vmem:[%s3596_s2 + $0x1d8] sm:$0xff]  }
  0x6c   :  { %v576_v41 = vadd.f32 1.0, %v568_v30  ;;  %v570_v47 = vmul.f32 %v562_v31, %v402_v50  ;;  %v595_v8 = vpack.c.bf16 %v587_v33, %v587_v33  ;;  %v298_v18 = vrot.slane %v2893_v53, %v2950_v54  ;;  %v2471_v31 = vld [vmem:[%s3596_s2 + $0x198] sm:$0xff]   ;;  %v2473_v33 = vld [vmem:[%s3596_s2 + $0x1e0] sm:$0xff]  }
  0x6d   :  { %v2521_v29 = vpop.eup %2520  ;;  %v429_v36 = vadd.f32 1.0, %v421_v7  ;;  %1149 = vmatprep.mubr.bf16.mxu0 %v593_v42  ;;  %v3123_v52 = vmul.f32 0.70710677, %v3117_v10  ;;  %v347_v60 = vrot.slane %v2924_v1, %v2950_v54  ;;  %v260_v39 = vadd.f32 1e-05, %v244_v35  ;;  %v2461_v54 = vld [vmem:[%s3596_s2 + $0x1c8] sm:$0xff]  }
  0x6e   :  { %v584_v43 = vmul.f32 %v576_v41, %v3018_v44  ;;  %v578_v14 = vadd.f32 1.0, %v570_v47  ;;  %v274_v20 = vmul.f32 %v2521_v29, %v250_v55  ;;  %1189 = vmatprep.mubr.bf16.mxu1 %v595_v8  ;;  %v2460_v44 = vld [vmem:[%s3596_s2 + $0x148] sm:$0xff]   ;;  %v525_v48 = vsub.f32 0.0, %v413_v2  ;;  %v2474_v42 = vld [vmem:[%s3596_s2 + $0x120] sm:$0xff]  }
  0x6f   :  { %2522 = vrcp.f32 %v429_v36  ;;  %v415_v22 = vand.u32 2147483647, %v3123_v52  ;;  %v252_v27 = vsub.f32 %v3004_v21, %v3085_v5  ;;  %v2472_v21 = vld [vmem:[%s3596_s2 + $0x160] sm:$0xff]   ;;  %v2476_v35 = vld [vmem:[%s3596_s2 + $0x168] sm:$0xff]   ;;  %vm397_vm4 = vcmp.ge.f32.partialorder %v3100_v23, 0.0 }
  0x70   :  { %v592_v62 = vpack.c.bf16 %v584_v43, %v584_v43  ;;  %v586_v34 = vmul.f32 %v578_v14, %v378_v56  ;;  %v323_v61 = vmul.f32 %v298_v18, %v274_v20  ;;  %2524 = vrsqrt.f32 %v260_v39  ;;  %v2475_v8 = vld [vmem:[%s3596_s2 + $0x1a0] sm:$0xff]   ;;  %v2478_v20 = vld [vmem:[%s3596_s2 + $0x128] sm:$0xff]  }
  0x71   :  { %v423_v57 = vmul.f32 0.3275911, %v415_v22  ;;  %v533_v16 = vmul.f32 %v525_v48, %v413_v2  ;;  %v527_v50 = vsub.f32 0.0, %v415_v22  ;;  %v2470_v2 = vld [vmem:[%s3596_s2 + $0x118] sm:$0xff]   ;;  %v405_v23 = vsel %vm397_vm4, 1.0, %v2658_v49 }
  0x72   :  { %1150 = vmatmul.mubr.bf16.vlgmr.msra.gmra.mrb[0].mxu0 %v592_v62  ;;  %v594_v28 = vpack.c.bf16 %v586_v34, %v586_v34  ;;  %v3143_v40 = vadd.f32 %v347_v60, %v323_v61  ;;  %v2482_v61 = vld [vmem:[%s3596_s2 + $0x130] sm:$0xff]   ;;  %vm399_vm5 = vcmp.ge.f32.partialorder %v3123_v52, 0.0  ;;  %vm2660_vm8 = vmmov 0  }
  0x73   :  { %2292 = vmatpush3.bf16.msra.mxu0 %v2458_v15  ;;  %v431_v46 = vadd.f32 1.0, %v423_v57  ;;  %v546_v51 = vmul.f32 1.442695, %v533_v16  ;;  %v535_v7 = vmul.f32 %v527_v50, %v415_v22  ;;  %v2484_v57 = vld [vmem:[%s3596_s2 + $0x178] sm:$0xff]   ;;  %vm1504_vm9 = vcmask 1043456  }
  0x74   :  { %1190 = vmatmul.mubr.bf16.vlgmr.msra.gmra.mrb[0].mxu1 %v594_v28  ;;  %2293 = vmatprep.subr.bf16.mxu0 %v2460_v44  ;;  %v3152_v24 = vmul.f32 0.70710677, %v3143_v40  ;;  %v2481_v44 = vld [vmem:[%s3596_s2 + $0x1f0] sm:$0xff]   ;;  %v2485_v16 = vld [vmem:[%s3596_s2 + $0x1f8] sm:$0xff]   ;;  %vm1500_vm10 = vcmask 457728   ;;  %vm1279_vm11 = vcmask 261120  }
  0x75   :  { %2314 = vmatpush3.bf16.msra.mxu1 %v2459_v0  ;;  %2526 = vrcp.f32 %v431_v46  ;;  %v550_v14 = vmul.f32 1.442695, %v535_v7  ;;  %v2483_v46 = vld [vmem:[%s3596_s2 + $0x1b0] sm:$0xff]   ;;  %v2659_v7 = vmov 0.0   ;;  %vm1647_vm12 = vcmask 523520  }
  0x76   :  { %2315 = vmatprep.subr.bf16.mxu1 %v2461_v54  ;;  %v412_v17 = vand.u32 2147483647, %v3152_v24  ;;  %vm396_vm6 = vcmp.ge.f32.partialorder %v3152_v24, 0.0 }
  0x77   :  { %2294 = vmatpush3.bf16.msra.mxu0 %v2462_v3 }
  0x78   :  { %2295 = vmatprep.subr.bf16.mxu0 %v2464_v6  ;;  %v420_v26 = vmul.f32 0.3275911, %v412_v17  ;;  %v524_v18 = vsub.f32 0.0, %v412_v17 }
  0x79   :  { %v3164_v12 = vpop.eup %2522  ;;  %2316 = vmatpush3.bf16.msra.mxu1 %v2463_v38 }
  0x7a   :  { %2317 = vmatprep.subr.bf16.mxu1 %v2465_v63  ;;  %v453_v9 = vmul.f32 1.0614054, %v3164_v12  ;;  %v428_v11 = vadd.f32 1.0, %v420_v26  ;;  %v2525_v30 = vpop.eup %2524  ;;  %v532_v62 = vmul.f32 %v524_v18, %v412_v17 }
  0x7b   :  { %2296 = vmatpush3.bf16.msra.mxu0 %v2466_v59  ;;  %v276_v55 = vmul.f32 %v2525_v30, %v252_v27 }
  0x7c   :  { %2297 = vmatprep.subr.bf16.mxu0 %v2468_v25  ;;  %v461_v5 = vadd.f32 -1.4531521, %v453_v9  ;;  %2528 = vrcp.f32 %v428_v11  ;;  %v544_v63 = vmul.f32 1.442695, %v532_v62  ;;  %v2487_v9 = vld [vmem:[%s3596_s2 + $0x1b8] sm:$0xff]  }
  0x7d   :  { %2318 = vmatpush3.bf16.msra.mxu1 %v2467_v32  ;;  %2530 = vpow2.f32 %v546_v51  ;;  %v325_v41 = vmul.f32 %v306_v58, %v276_v55  ;;  %v2477_v58 = vld [vmem:[%s3596_s2 + $0x1e8] sm:$0xff]   ;;  %v2486_v32 = vld [vmem:[%s3596_s2 + $0x138] sm:$0xff]  }
  0x7e   :  { %2319 = vmatprep.subr.bf16.mxu1 %v2469_v19  ;;  %v469_v56 = vmul.f32 %v3164_v12, %v461_v5  ;;  %2532 = vpow2.f32 %v550_v14 }
  0x7f   :  { %2298 = vmatpush3.bf16.msra.mxu0 %v2470_v2  ;;  %v3194_v47 = vpop.eup %2526  ;;  %v3206_v53 = vadd.f32 %v355_v13, %v325_v41  ;;  %v2479_v13 = vld [vmem:[%s3596_s2 + $0x1a8] sm:$0xff]  }
  0x80   :  { %2299 = vmatprep.subr.bf16.mxu0 %v2472_v21  ;;  %v477_v29 = vadd.f32 1.4214138, %v469_v56  ;;  %v455_v36 = vmul.f32 1.0614054, %v3194_v47  ;;  %v381_v21 = vmul.f32 0.5, %v3095_v4 }
  0x81   :  { %2320 = vmatpush3.bf16.msra.mxu1 %v2471_v31  ;;  %v3216_v60 = vmul.f32 0.70710677, %v3206_v53 }
  0x82   :  { %2321 = vmatprep.subr.bf16.mxu1 %v2473_v33  ;;  %v485_v43 = vmul.f32 %v3164_v12, %v477_v29  ;;  %v463_v15 = vadd.f32 -1.4531521, %v455_v36  ;;  %v407_v29 = vsel %vm399_vm5, 1.0, %v2658_v49 }
  0x83   :  { %2300 = vmatpush3.bf16.msra.mxu0 %v2474_v42  ;;  %v414_v34 = vand.u32 2147483647, %v3216_v60  ;;  %vm398_vm7 = vcmp.ge.f32.partialorder %v3216_v60, 0.0  ;;  %v2489_v60 = vld [vmem:[%s3601_s7 + $0x8] sm:$0xff]  }
  0x84   :  { %2301 = vmatprep.subr.bf16.mxu0 %v2476_v35  ;;  %v493_v1 = vadd.f32 -0.28449672, %v485_v43  ;;  %v471_v39 = vmul.f32 %v3194_v47, %v463_v15 }
  0x85   :  { %2322 = vmatpush3.bf16.msra.mxu1 %v2475_v8  ;;  %v422_v54 = vmul.f32 0.3275911, %v414_v34  ;;  %v526_v11 = vsub.f32 0.0, %v414_v34 }
  0x86   :  { %2323 = vmatprep.subr.bf16.mxu1 %v2477_v58  ;;  %v501_v22 = vmul.f32 %v3164_v12, %v493_v1  ;;  %v3230_v0 = vpop.eup %2528  ;;  %v479_v28 = vadd.f32 1.4214138, %v471_v39 }
  0x87   :  { %2302 = vmatpush3.bf16.msra.mxu0 %v2478_v20  ;;  %v452_v48 = vmul.f32 1.0614054, %v3230_v0  ;;  %v2531_v6 = vpop.eup %2530  ;;  %v430_v59 = vadd.f32 1.0, %v422_v54  ;;  %v534_v41 = vmul.f32 %v526_v11, %v414_v34  ;;  %v404_v34 = vsel %vm396_vm6, 1.0, %v2658_v49  ;;  %v1342_v11 = vld [vmem:[%s3597_s3 + $0x10] sm:$0xff] }
  0x88   :  { %2303 = vmatprep.subr.bf16.mxu0 %v2480_v45  ;;  %v509_v3 = vadd.f32 0.2548296, %v501_v22  ;;  %v487_v38 = vmul.f32 %v3194_v47, %v479_v28  ;;  %v2533_v30 = vpop.eup %2532 }
  0x89   :  { %2324 = vmatpush3.bf16.msra.mxu1 %v2479_v13  ;;  %v460_v25 = vadd.f32 -1.4531521, %v452_v48  ;;  %2534 = vrcp.f32 %v430_v59  ;;  %v548_v20 = vmul.f32 1.442695, %v534_v41 }
  0x8a   :  { %2325 = vmatprep.subr.bf16.mxu1 %v2481_v44  ;;  %v517_v17 = vmul.f32 %v3164_v12, %v509_v3  ;;  %v495_v26 = vadd.f32 -0.28449672, %v487_v38  ;;  %2536 = vpow2.f32 %v544_v63 }
  0x8b   :  { %2304 = vmatpush3.bf16.msra.mxu0 %v2482_v61  ;;  %v468_v19 = vmul.f32 %v3230_v0, %v460_v25  ;;  %2538 = vpow2.f32 %v548_v20 }
  0x8c   :  { %2305 = vmatprep.subr.bf16.mxu0 %v2484_v57  ;;  %v557_v27 = vmul.f32 %v2531_v6, %v517_v17  ;;  %v503_v12 = vmul.f32 %v3194_v47, %v495_v26  ;;  %v2488_v26 = vld [vmem:[%s3601_s7] sm:$0xff]  }
  0x8d   :  { %2326 = vmatpush3.bf16.msra.mxu1 %v2483_v46  ;;  %v476_v2 = vadd.f32 1.4214138, %v468_v19  ;;  %v2491_v19 = vld [vmem:[%s3601_s7 + $0x18] ss:$0 sps:$4 sm:$0xff]  }
  0x8e   :  { %2327 = vmatprep.subr.bf16.mxu1 %v2485_v16  ;;  %v565_v50 = vsub.f32 1.0, %v557_v27  ;;  %v511_v51 = vadd.f32 0.2548296, %v503_v12  ;;  %v382_v16 = vmul.f32 0.5, %v3206_v53  ;;  %v2490_v53 = vld [vmem:[%s3601_s7 + $0x10] sm:$0xff]   ;;  %v1506_v12 = vsel %vm1504_vm9, %v2491_v19, 0 }
  0x8f   :  { %2306 = vmatpush3.bf16.msra.mxu0 %v2486_v32  ;;  %v484_v31 = vmul.f32 %v3230_v0, %v476_v2  ;;  %v1340_v2 = vld [vmem:[%s3597_s3] sm:$0xff] }
  0x90   :  { %v573_v5 = vmul.f32 %v565_v50, %v405_v23  ;;  %v519_v55 = vmul.f32 %v3194_v47, %v511_v51  ;;  %v383_v47 = vmul.f32 0.5, %v3117_v10  ;;  %v380_v10 = vmul.f32 0.5, %v3143_v40  ;;  %v1463_v23 = vld [vmem:[%s3600_s6 + $0x8] sm:$0xff] }
  0x91   :  { %2328 = vmatpush3.bf16.msra.mxu1 %v2487_v9  ;;  %v492_v56 = vadd.f32 -0.28449672, %v484_v31  ;;  %v406_v40 = vsel %vm398_vm7, 1.0, %v2658_v49  ;;  %v1462_v9 = vld [vmem:[%s3600_s6] sm:$0xff]  ;;  %v1341_v51 = vld [vmem:[%s3597_s3 + $0x8] sm:$0xff] }
  0x92   :  { %v581_v33 = vadd.f32 1.0, %v573_v5  ;;  %2368 = vmatprep.subr.bf16.mxu1 %v2659_v7  ;;  %v559_v42 = vmul.f32 %v2533_v30, %v519_v55  ;;  %v1464_v50 = vpack.c.bf16 %v1463_v23, %v1462_v9  ;;  %v2661_v30 = vmov 0.0|0.0   ;;  %v1343_v5 = vld [vmem:[%s3597_s3 + $0x18] sm:$0xff] }
  0x93   :  { %v500_v4 = vmul.f32 %v3230_v0, %v492_v56  ;;  %v2535_v8 = vpop.eup %2534  ;;  %2402 = vmatprep.subr.bf16.mxu0 %v2661_v30  ;;  %v2406_v31 = vpack.c.bf16 %v1343_v5, %v1342_v11 }
  0x94   :  { %v589_v35 = vmul.f32 %v581_v33, %v381_v21  ;;  %v567_v36 = vsub.f32 1.0, %v559_v42  ;;  %v454_v43 = vmul.f32 1.0614054, %v2535_v8  ;;  %v2537_v52 = vpop.eup %2536  ;;  %v2403_v21 = vpack.c.bf16 %v1341_v51, %v1340_v2  ;;  %v2160_v33 = vld [vmem:[%s3598_s4] ss:$0 sm:$0xff] }
  0x95   :  { %v508_v58 = vadd.f32 0.2548296, %v500_v4  ;;  %v2539_v46 = vpop.eup %2538 }
  0x96   :  { %v597_v18 = vpack.c.bf16 %v589_v35, %v589_v35  ;;  %v575_v14 = vmul.f32 %v567_v36, %v407_v29  ;;  %v462_v45 = vadd.f32 -1.4531521, %v454_v43  ;;  %v3318_v43 = vld [vmem:[%s3598_s4 + $0x6] ss:$0 sm:$0xff] }
  0x97   :  { %v516_v15 = vmul.f32 %v3230_v0, %v508_v58  ;;  %1683 = vrot.lane.b32.xlu1 %v3318_v43, %s2662_s16 }
  0x98   :  { %1229 = vmatprep.mubr.bf16.mxu0 %v597_v18  ;;  %v583_v1 = vadd.f32 1.0, %v575_v14  ;;  %v470_v39 = vmul.f32 %v2535_v8, %v462_v45  ;;  %v3330_v14 = vld [vmem:[%s3598_s4 + $0x5] ss:$0 sm:$0xff] }
  0x99   :  { %v556_v13 = vmul.f32 %v2537_v52, %v516_v15  ;;  %v2229_v52 = vld [vmem:[%s3598_s4 + $0x4] ss:$0 sm:$0xff] }
  0x9a   :  { %v591_v62 = vmul.f32 %v583_v1, %v383_v47  ;;  %v478_v22 = vadd.f32 1.4214138, %v470_v39  ;;  %1429 = vrot.lane.b32.xlu0 %v2229_v52, %s2662_s16  ;;  %v1450_v47 = vld [vmem:[%s3599_s5] sm:$0xff] }
  0x9b   :  { %v564_v44 = vsub.f32 1.0, %v556_v13  ;;  %1452 = vrot.lane.b32.xlu1 %v1450_v47, %s2662_s16 }
  0x9c   :  { %v599_v61 = vpack.c.bf16 %v591_v62, %v591_v62  ;;  %v486_v54 = vmul.f32 %v2535_v8, %v478_v22 }
  0x9d   :  { %v572_v28 = vmul.f32 %v564_v44, %v404_v34 }
  0x9e   :  { %1269 = vmatprep.mubr.bf16.mxu1 %v599_v61  ;;  %v494_v24 = vadd.f32 -0.28449672, %v486_v54  ;;  %1677 = vrot.lane.b32.xlu0 %v3330_v14, %s2662_s16 }
  0x9f   :  { %v580_v57 = vadd.f32 1.0, %v572_v28 }
  0xa0   :  { %v502_v0 = vmul.f32 %v2535_v8, %v494_v24 }
  0xa1   :  { %v588_v3 = vmul.f32 %v580_v57, %v380_v10 }
  0xa2   :  { %v510_v6 = vadd.f32 0.2548296, %v502_v0 }
  0xa3   :  { %v596_v48 = vpack.c.bf16 %v588_v3, %v588_v3 }
  0xa4   :  { %v518_v38 = vmul.f32 %v2535_v8, %v510_v6 }
  0xa5   :  { %1230 = vmatmul.mubr.bf16.vlgmr.msra.gmra.mrb[4].mxu0 %v596_v48 }
  0xa6   :  { %2365 = vmatprep.mubr.msk.f32.mxu0 %vm2660_vm8, %v2659_v7  ;;  %v558_v63 = vmul.f32 %v2539_v46, %v518_v38  ;;  %2404 = vmatpush3.bf16.msra.mxu0 %v2403_v21 }
  0xa7   :  { %2405 = vmatprep.subr.bf16.mxu0 %v2661_v30 }
  0xa8   :  { %v566_v59 = vsub.f32 1.0, %v558_v63  ;;  %v2230_v63 = vld [vmem:[%s3602_s8] ss:$0 sm:$0xff] }
  0xaa   :  { %v574_v17 = vmul.f32 %v566_v59, %v406_v40  ;;  %2407 = vmatpush3.bf16.msra.mxu0 %v2406_v31 }
  0xac   :  { %v582_v25 = vadd.f32 1.0, %v574_v17 }
  0xae   :  { %v590_v32 = vmul.f32 %v582_v25, %v382_v16 }
  0xb0   :  { %v598_v27 = vpack.c.bf16 %v590_v32, %v590_v32 }
  0xb2   :  { %1270 = vmatmul.mubr.bf16.vlgmr.msra.gmra.mrb[4].mxu1 %v598_v27 }
  0xb3   :  { %2369 = vmatpush3.bf16.msra.mxu1 %v2488_v26  ;;  %2376 = vmatprep.mubr.msk.bf16.mxu1 %vm2660_vm8, %v2659_v7 }
  0xb4   :  { %2370 = vmatprep.subr.bf16.mxu1 %v2659_v7 }
  0xb7   :  { %2371 = vmatpush3.bf16.msra.mxu1 %v2489_v60 }
  0xb8   :  { %2372 = vmatprep.subr.bf16.mxu1 %v2659_v7 }
  0xbb   :  { %2373 = vmatpush3.bf16.msra.mxu1 %v2490_v53 }
  0xbc   :  { %2374 = vmatprep.subr.bf16.mxu1 %v2659_v7 }
  0xbf   :  { %2375 = vmatpush3.bf16.msra.mxu1 %v1506_v12 }
  0xc0   :  { %2380 = vmatprep.subr.mxu1 %v2659_v7 }
  0xc2   :  { %2377 = vmatmul.mubr.msk.bf16.vlgmr.msra.gmra.mrb[8].mxu1 %vm1500_vm10, %v1464_v50 }
  0xc3   :  { %2382 = vmatprep.mubr.msk.f32.mxu1 %vm2660_vm8, %v2659_v7 }
 0x145   :  { %v2263_v55 = vpop.f32.mrb[0].mxu0 }
 0x146   :  { %v2264_v56 = vpop.f32.mrb[1].mxu0 }
 0x147   :  { %v2285_v7 = vpop.f32.mrb[0].mxu1  ;;  %v2265_v42 = vadd.f32 %v2264_v56, %v2263_v55  ;;  %v2266_v41 = vpop.f32.mrb[2].mxu0 }
 0x148   :  { %v2286_v35 = vpop.f32.mrb[1].mxu1  ;;  %v2267_v29 = vpop.f32.mrb[3].mxu0 }
 0x149   :  { %v1152_v4 = vadd.f32 %v2265_v42, %v2160_v33  ;;  %v2287_v8 = vadd.f32 %v2286_v35, %v2285_v7  ;;  %v2288_v36 = vpop.f32.mrb[2].mxu1 }
 0x14a   :  { %v2289_v18 = vpop.f32.mrb[3].mxu1 }
 0x14b   :  { %v1192_v58 = vadd.f32 %v2287_v8, %v1152_v4 }
 0x178   :  { %v2307_v20 = vpop.f32.mrb[4].mxu0 }
 0x179   :  { %v2308_v15 = vpop.f32.mrb[5].mxu0 }
 0x17a   :  { %v2309_v45 = vadd.f32 %v2308_v15, %v2307_v20  ;;  %v2310_v1 = vpop.f32.mrb[6].mxu0 }
 0x17b   :  { %v2311_v13 = vpop.f32.mrb[7].mxu0 }
 0x17c   :  { %v1232_v39 = vadd.f32 %v2309_v45, %v1192_v58 }
 0x185   :  { %v2329_v62 = vpop.f32.mrb[4].mxu1 }
 0x186   :  { %v2330_v34 = vpop.f32.mrb[5].mxu1 }
 0x187   :  { %v2331_v44 = vadd.f32 %v2330_v34, %v2329_v62  ;;  %v2332_v22 = vpop.f32.mrb[6].mxu1 }
 0x188   :  { %v2333_v61 = vpop.f32.mrb[7].mxu1 }
 0x189   :  { %v3333_v10 = vadd.f32 %v2331_v44, %v1232_v39 }
 0x18b   :  { %v1280_v28 = vsel %vm1279_vm11, %v3333_v10, 0.0  ;;  %v1288_v54 = vmul.f32 %v3333_v10, %v3333_v10 }
 0x18c   :  { %v1281_v57 = vrot.slane %v1280_v28, 4 }
 0x18d   :  { %v1289_v24 = vsel %vm1279_vm11, %v1288_v54, 0.0 }
 0x18e   :  { %v1282_v3 = vadd.f32 %v1281_v57, %v1280_v28  ;;  %v1290_v0 = vrot.slane %v1289_v24, 4 }
 0x190   :  { %v1283_v48 = vrot.slane %v1282_v3, 2  ;;  %v1291_v6 = vadd.f32 %v1290_v0, %v1289_v24 }
 0x192   :  { %v1284_v46 = vadd.f32 %v1283_v48, %v1282_v3  ;;  %v1292_v38 = vrot.slane %v1291_v6, 2  ;;  %v2225_v48 = vld [vmem:[%s3598_s4 + $0x1] ss:$0 sm:$0xff] }
 0x194   :  { %v1285_v40 = vrot.slane %v1284_v46, 1  ;;  %v1293_v59 = vadd.f32 %v1292_v38, %v1291_v6 }
 0x195   :  { %v1542_v16 = vpop.f32.mrb[8].mxu1 }
 0x196   :  { %v1286_v17 = vadd.f32 %v1285_v40, %v1284_v46  ;;  %v1294_v25 = vrot.slane %v1293_v59, 1  ;;  %v3343_v32 = vadd.f32 %v2230_v63, %v1542_v16  ;;  %v2378_v26 = vpop.f32.mrb[9].mxu1 }
 0x197   :  { %v1545_v27 = vpop.f32.mrb[10].mxu1 }
 0x198   :  { %v1287_v60 = vmul.f32 0.125, %v1286_v17  ;;  %v1295_v53 = vadd.f32 %v1294_v25, %v1293_v59  ;;  %v1619_v19 = vmul.f32 %v3343_v32, %v3343_v32  ;;  %1551 = vrot.lane.b32.xlu0 %v3343_v32, %s2663_s21  ;;  %v2379_v9 = vpop.f32.mrb[11].mxu1  ;;  %v1609_v23 = vsel %vm1279_vm11, %v3343_v32, 0.0  ;;  %v2226_v59 = vld [vmem:[%s3598_s4 + $0x2] ss:$0 sm:$0xff] }
 0x199   :  { %v3351_v12 = vadd.f32 %v2230_v63, %v1545_v27  ;;  %v1648_v50 = vsel %vm1647_vm12, %v3343_v32, 0.0 }
 0x19a   :  { %v1296_v2 = vmul.f32 0.125, %v1295_v53  ;;  %v1297_v51 = vmul.f32 %v1287_v60, %v1287_v60  ;;  %v1621_v11 = vsel %vm1279_vm11, %v1619_v19, 0.0  ;;  %v1658_v56 = vsel %vm1647_vm12, %v1619_v19, 0.0 }
 0x19b   :  { %v1610_v30 = vsel %vm1279_vm11, %v3351_v12, 0.0  ;;  %v1620_v21 = vmul.f32 %v3351_v12, %v3351_v12  ;;  %1553 = vrot.lane.b32.xlu1 %v3351_v12, %s2663_s21  ;;  %v1649_v5 = vsel %vm1647_vm12, %v3351_v12, 0.0  ;;  %v1299_v24 = vsub.f32 %v3333_v10, %v1287_v60 }
 0x19c   :  { %v1298_v31 = vsub.f32 %v1296_v2, %v1297_v51  ;;  %v1611_v55 = vadd.f32 %v1610_v30, %v1609_v23  ;;  %v1650_v33 = vadd.f32 %v1649_v5, %v1648_v50 }
 0x19d   :  { %v1622_v7 = vsel %vm1279_vm11, %v1620_v21, 0.0  ;;  %v1659_v42 = vsel %vm1647_vm12, %v1620_v21, 0.0 }
 0x19e   :  { %v1300_v41 = vadd.f32 1e-05, %v1298_v31  ;;  %v1612_v35 = vrot.slane %v1611_v55, 4  ;;  %v1623_v29 = vadd.f32 %v1622_v7, %v1621_v11  ;;  %v1651_v4 = vrot.slane %v1650_v33, 4 }
 0x19f   :  { %v1660_v8 = vadd.f32 %v1659_v42, %v1658_v56 }
 0x1a0   :  { %2540 = vrsqrt.f32 %v1300_v41  ;;  %v1613_v36 = vadd.f32 %v1612_v35, %v1611_v55  ;;  %v1624_v18 = vrot.slane %v1623_v29, 4  ;;  %v1652_v58 = vadd.f32 %v1651_v4, %v1650_v33 }
 0x1a1   :  { %v1661_v52 = vrot.slane %v1660_v8, 4 }
 0x1a2   :  { %v1614_v47 = vrot.slane %v1613_v36, 2  ;;  %v1625_v20 = vadd.f32 %v1624_v18, %v1623_v29  ;;  %v1653_v15 = vrot.slane %v1652_v58, 2 }
 0x1a3   :  { %v1662_v45 = vadd.f32 %v1661_v52, %v1660_v8 }
 0x1a4   :  { %v1615_v1 = vadd.f32 %v1614_v47, %v1613_v36  ;;  %v1626_v13 = vrot.slane %v1625_v20, 2  ;;  %v1654_v39 = vadd.f32 %v1653_v15, %v1652_v58 }
 0x1a5   :  { %v1663_v62 = vrot.slane %v1662_v45, 2 }
 0x1a6   :  { %v1616_v34 = vrot.slane %v1615_v1, 1  ;;  %v1627_v44 = vadd.f32 %v1626_v13, %v1625_v20  ;;  %v1655_v22 = vrot.slane %v1654_v39, 1 }
 0x1a7   :  { %v1664_v61 = vadd.f32 %v1663_v62, %v1662_v45 }
 0x1a8   :  { %v1617_v28 = vadd.f32 %v1616_v34, %v1615_v1  ;;  %v1628_v54 = vrot.slane %v1627_v44, 1  ;;  %v1656_v57 = vadd.f32 %v1655_v22, %v1654_v39  ;;  %v3393_v1 = vpop.permute.xlu0 %1429 }
 0x1a9   :  { %v1665_v3 = vrot.slane %v1664_v61, 1 }
 0x1aa   :  { %v2541_v0 = vpop.eup %2540  ;;  %v1618_v6 = vmul.f32 0.0625, %v1617_v28  ;;  %v1629_v46 = vadd.f32 %v1628_v54, %v1627_v44  ;;  %v3371_v38 = vmul.f32 0.0625, %v1656_v57  ;;  %v1684_v28 = vpop.permute.xlu1 %1683 }
 0x1ab   :  { %v1302_v63 = vmul.f32 %v2541_v0, %v1299_v24  ;;  %v1666_v40 = vadd.f32 %v1665_v3, %v1664_v61 }
 0x1ac   :  { %v1630_v16 = vmul.f32 0.0625, %v1629_v46  ;;  %v1631_v17 = vmul.f32 %v1618_v6, %v1618_v6  ;;  %v1668_v26 = vmul.f32 %v3371_v38, %v3371_v38  ;;  %v1633_v11 = vsub.f32 %v3343_v32, %v1618_v6  ;;  %v1678_v34 = vpop.permute.xlu0 %1677 }
 0x1ad   :  { %v1307_v25 = vmul.f32 %v2225_v48, %v1302_v63  ;;  %v1667_v10 = vmul.f32 0.0625, %v1666_v40  ;;  %v1634_v30 = vsub.f32 %v3351_v12, %v1618_v6  ;;  %v1671_v21 = vsub.f32 %v3351_v12, %v3371_v38 }
 0x1ae   :  { %v1632_v27 = vsub.f32 %v1630_v16, %v1631_v17  ;;  %v3399_v48 = vpop.permute.xlu1 %1452 }
 0x1af   :  { %v1312_v60 = vadd.f32 %v2226_v59, %v1307_v25  ;;  %v1669_v53 = vsub.f32 %v1667_v10, %v1668_v26 }
 0x1b0   :  { %v1635_v19 = vadd.f32 1e-05, %v1632_v27 }
 0x1b1   :  { %v1314_v9 = vmul.f32 0.70710677, %v1312_v60  ;;  %v1672_v23 = vadd.f32 1e-05, %v1669_v53  ;;  %v1313_v24 = vmul.f32 0.5, %v1312_v60 }
 0x1b2   :  { %2542 = vrsqrt.f32 %v1635_v19 }
 0x1b3   :  { %v1317_v50 = vand.u32 2147483647, %v1314_v9  ;;  %2544 = vrsqrt.f32 %v1672_v23  ;;  %vm1315_vm13 = vcmp.ge.f32.partialorder %v1314_v9, 0.0 }
 0x1b4   :  { %v1316_v61 = vsel %vm1315_vm13, 1.0, %v2658_v49 }
 0x1b5   :  { %v1318_v2 = vmul.f32 0.3275911, %v1317_v50  ;;  %v1331_v7 = vsub.f32 0.0, %v1317_v50 }
 0x1b7   :  { %v1319_v51 = vadd.f32 1.0, %v1318_v2  ;;  %v1332_v29 = vmul.f32 %v1331_v7, %v1317_v50 }
 0x1b9   :  { %2546 = vrcp.f32 %v1319_v51  ;;  %v1333_v18 = vmul.f32 1.442695, %v1332_v29  ;;  %v1670_v29 = vsub.f32 %v3343_v32, %v3371_v38 }
 0x1bb   :  { %2548 = vpow2.f32 %v1333_v18 }
 0x1bc   :  { %v2543_v5 = vpop.eup %2542 }
 0x1bd   :  { %v3382_v31 = vpop.eup %2544  ;;  %v3384_v55 = vmul.f32 %v2543_v5, %v1633_v11  ;;  %v1638_v33 = vmul.f32 %v2543_v5, %v1634_v30 }
 0x1be   :  { %v1675_v56 = vmul.f32 %v3382_v31, %v1671_v21  ;;  %v1674_v18 = vmul.f32 %v3382_v31, %v1670_v29  ;;  %v1784_v31 = vld [vmem:[%s3603_s9] sm:$0xff] }
 0x1bf   :  { %v1640_v42 = vmul.f32 %v3330_v14, %v1638_v33 }
 0x1c0   :  { %v1681_v22 = vmul.f32 %v1678_v34, %v1675_v56 }
 0x1c1   :  { %v1642_v41 = vadd.f32 %v3318_v43, %v1640_v42 }
 0x1c2   :  { %v3396_v57 = vadd.f32 %v1684_v28, %v1681_v22 }
 0x1c3   :  { %v2547_v35 = vpop.eup %2546  ;;  %v1644_v4 = vmax.f32 %v1642_v41, 0.0 }
 0x1c4   :  { %v1322_v8 = vmul.f32 1.0614054, %v2547_v35 }
 0x1c5   :  { %1646 = vst.msk [vmem:[%s3607_s13 + $0x18] sm:$0xff] %vm1279_vm11, %v1644_v4  ;;  %v2549_v39 = vpop.eup %2548 }
 0x1c6   :  { %v1323_v36 = vadd.f32 -1.4531521, %v1322_v8 }
 0x1c8   :  { %v1324_v58 = vmul.f32 %v2547_v35, %v1323_v36 }
 0x1ca   :  { %v1325_v52 = vadd.f32 1.4214138, %v1324_v58 }
 0x1cc   :  { %v1326_v47 = vmul.f32 %v2547_v35, %v1325_v52 }
 0x1ce   :  { %v1327_v20 = vadd.f32 -0.28449672, %v1326_v47 }
 0x1d0   :  { %v1328_v15 = vmul.f32 %v2547_v35, %v1327_v20 }
 0x1d2   :  { %v1329_v45 = vadd.f32 0.2548296, %v1328_v15  ;;  %v1639_v15 = vmul.f32 %v3330_v14, %v3384_v55  ;;  %v1786_v55 = vld [vmem:[%s3603_s9 + $0x10] sm:$0xff] }
 0x1d4   :  { %v1330_v13 = vmul.f32 %v2547_v35, %v1329_v45  ;;  %v1680_v45 = vmul.f32 %v1678_v34, %v1674_v18  ;;  %v1787_v34 = vld [vmem:[%s3603_s9 + $0x18] sm:$0xff]  ;;  %v2246_v18 = vld [vmem:[%s3605_s11] ss:$0 sm:$0xff] }
 0x1d6   :  { %v1335_v62 = vmul.f32 %v2549_v39, %v1330_v13  ;;  %v1686_v22 = vadd.f32 %v1684_v28, %v1680_v45  ;;  %v2412_v28 = vpack.c.bf16 %v1787_v34, %v1786_v55 }
 0x1d8   :  { %v1336_v44 = vsub.f32 1.0, %v1335_v62  ;;  %v1785_v62 = vld [vmem:[%s3603_s9 + $0x8] sm:$0xff] }
 0x1da   :  { %v1337_v54 = vmul.f32 %v1336_v44, %v1316_v61  ;;  %v2408_v44 = vpack.c.bf16 %v1785_v62, %v1784_v31 }
 0x1dc   :  { %v1338_v3 = vadd.f32 1.0, %v1337_v54  ;;  %2409 = vmatprep.subr.bf16.mxu0 %v2408_v44  ;;  %v1688_v54 = vmax.f32 %v1686_v22, 0.0 }
 0x1de   :  { %v1339_v0 = vmul.f32 %v1338_v3, %v1313_v24  ;;  %1692 = vrot.lane.b32.xlu1 %v1688_v54, %s2663_s21 }
 0x1e0   :  { %2366 = vmatmul.mubr.msk.f32.vlgmr.msra.gmra.mrb[8].mxu0 %vm1279_vm11, %v1339_v0  ;;  %v1781_v0 = vld [vmem:[%s3607_s13 + $0x18] sm:$0xff] }
 0x1e1   :  { %2411 = vmatpush3.bf16.msra.mxu0 %v2408_v44 }
 0x1e2   :  { %2413 = vmatprep.subr.bf16.mxu0 %v2412_v28 }
 0x1e5   :  { %2415 = vmatpush3.bf16.msra.mxu0 %v2412_v28 }
 0x20a   :  { %v1552_v6 = vpop.permute.xlu0 %1551 }
 0x20b   :  { %v1557_v46 = vadd.f32 %v1552_v6, %v3343_v32 }
 0x20d   :  { %v1559_v63 = vmul.f32 0.5, %v1557_v46  ;;  %v1554_v40 = vpop.permute.xlu1 %1553 }
 0x20e   :  { %v1558_v59 = vadd.f32 %v1554_v40, %v3351_v12 }
 0x20f   :  { %v1573_v16 = vmul.f32 %v1559_v63, %v1559_v63  ;;  %v1563_v49 = vsel %vm1279_vm11, %v1559_v63, 0.0 }
 0x210   :  { %v1560_v17 = vmul.f32 0.5, %v1558_v59 }
 0x211   :  { %v1575_v25 = vsel %vm1279_vm11, %v1573_v16, 0.0 }
 0x212   :  { %v1564_v10 = vsel %vm1279_vm11, %v1560_v17, 0.0  ;;  %v1574_v26 = vmul.f32 %v1560_v17, %v1560_v17 }
 0x213   :  { %v1565_v27 = vadd.f32 %v1564_v10, %v1563_v49 }
 0x214   :  { %v1576_v60 = vsel %vm1279_vm11, %v1574_v26, 0.0 }
 0x215   :  { %v1566_v53 = vrot.slane %v1565_v27, 4  ;;  %v1577_v19 = vadd.f32 %v1576_v60, %v1575_v25 }
 0x217   :  { %v1567_v9 = vadd.f32 %v1566_v53, %v1565_v27  ;;  %v1578_v23 = vrot.slane %v1577_v19, 4 }
 0x219   :  { %v1568_v50 = vrot.slane %v1567_v9, 2  ;;  %v1579_v2 = vadd.f32 %v1578_v23, %v1577_v19 }
 0x21b   :  { %v1569_v51 = vadd.f32 %v1568_v50, %v1567_v9  ;;  %v1580_v12 = vrot.slane %v1579_v2, 2 }
 0x21d   :  { %v1570_v11 = vrot.slane %v1569_v51, 1  ;;  %v1581_v30 = vadd.f32 %v1580_v12, %v1579_v2  ;;  %v1689_v12 = vmax.f32 %v3396_v57, 0.0 }
 0x21f   :  { %v1571_v21 = vadd.f32 %v1570_v11, %v1569_v51  ;;  %v1582_v5 = vrot.slane %v1581_v30, 1 }
 0x221   :  { %v1572_v33 = vmul.f32 0.0625, %v1571_v21  ;;  %v1583_v56 = vadd.f32 %v1582_v5, %v1581_v30 }
 0x223   :  { %v1584_v7 = vmul.f32 0.0625, %v1583_v56  ;;  %v1585_v42 = vmul.f32 %v1572_v33, %v1572_v33  ;;  %v1587_v4 = vsub.f32 %v1559_v63, %v1572_v33  ;;  %v1588_v8 = vsub.f32 %v1560_v17, %v1572_v33  ;;  %v2228_v33 = vld [vmem:[%s3598_s4 + $0x3] ss:$0 sm:$0xff] }
 0x225   :  { %v1586_v41 = vsub.f32 %v1584_v7, %v1585_v42  ;;  %v1700_v7 = vld [vmem:[%s3604_s10] sm:$0xff]  ;;  %s2665_s10 = smov [#allocation2]  }
 0x226   :  { %s2141_s30 = sshll.u32 %s2665_s10, 4  ;;  %s2142_s30 = int_to_ptr.vmem [resolvable:$true] %s2141_s30 }
 0x227   :  { %v1589_v35 = vadd.f32 1e-05, %v1586_v41  ;;  %s2634_s1 = scalar_lea.vmem %s2142_s30, 128  ;;  %p2639_p1 = scmp.lt.s32.totalorder %s2142_s30, %s2142_s30 }
 0x228   :  { %p2635_p0 = scmp.ne.s32.totalorder %s2142_s30, %s2634_s1  ;;  %p2640_p2 = scmp.lt.s32.totalorder %s2634_s1, %s2634_s1 }
 0x229   :  { %2550 = vrsqrt.f32 %v1589_v35  ;;  %v2664_v35 = vmov 1.0  }
 0x22a   :  { %p2641_p3 = por %p2640_p2, %p2639_p1 }
 0x22c   :  { %p2642_p4 = pnand %p2641_p3, %p2635_p0 }
 0x233   :  { %v2551_v36 = vpop.eup %2550 }
 0x234   :  { %v1591_v58 = vmul.f32 %v2551_v36, %v1587_v4  ;;  %v1592_v52 = vmul.f32 %v2551_v36, %v1588_v8 }
 0x236   :  { %v1597_v47 = vmul.f32 %v3330_v14, %v1591_v58  ;;  %v1598_v20 = vmul.f32 %v3330_v14, %v1592_v52  ;;  %v1641_v14 = vadd.f32 %v3318_v43, %v1639_v15 }
 0x238   :  { %v1603_v13 = vadd.f32 %v3318_v43, %v1597_v47  ;;  %v1604_v39 = vadd.f32 %v3318_v43, %v1598_v20  ;;  %v1643_v61 = vmax.f32 %v1641_v14, 0.0 }
 0x23a   :  { %v1605_v32 = vmax.f32 %v1603_v13, 0.0  ;;  %v1606_v38 = vmax.f32 %v1604_v39, 0.0  ;;  %1645 = vst.msk [vmem:[%s3607_s13 + $0x10] sm:$0xff] %vm1279_vm11, %v1643_v61 }
 0x23c   :  { %1607 = vst.msk [vmem:[%s3607_s13] sm:$0xff] %vm1279_vm11, %v1605_v32  ;;  %1608 = vst.msk [vmem:[%s3607_s13 + $0x8] sm:$0xff] %vm1279_vm11, %v1606_v38 }
 0x241   :  { %v1780_v3 = vld [vmem:[%s3607_s13 + $0x10] sm:$0xff] }
 0x243   :  { %v1778_v43 = vld [vmem:[%s3607_s13] sm:$0xff]  ;;  %v1779_v24 = vld [vmem:[%s3607_s13 + $0x8] sm:$0xff] }
 0x244   :  { %2393 = vmatprep.mubr.msk.f32.mxu0 %vm1279_vm11, %v1778_v43 }
 0x245   :  { %2394 = vmatmul.mubr.msk.f32.vlgmr.msra.gmra.mrb[10].mxu0 %vm1279_vm11, %v1779_v24 }
 0x246   :  { %2396 = vmatprep.mubr.msk.f32.mxu0 %vm1279_vm11, %v1780_v3 }
 0x249   :  { %2397 = vmatmul.mubr.msk.f32.gmra.mrb[12].mxu0 %vm1279_vm11, %v1781_v0 }
 0x250   :  { %v1693_v40 = vpop.permute.xlu1 %1692 }
 0x251   :  { %1698 = vst.msk [vmem:[%s3607_s13 + $0x20] sm:$0xff] %vm1279_vm11, %v1693_v40 }
 0x258   :  { %v1782_v17 = vld [vmem:[%s3607_s13 + $0x20] sm:$0xff] }
 0x259   :  { %2399 = vmatprep.mubr.msk.f32.mxu0 %vm1279_vm11, %v1782_v17 }
 0x2b3   :  { %v1413_v6 = vpop.f32.mrb[8].mxu0 }
 0x2b4   :  { %v1432_v46 = vadd.f32 %v3393_v1, %v1413_v6  ;;  %v2367_v63 = vpop.f32.mrb[9].mxu0  ;;  %v1422_v56 = vadd.f32 %v2228_v33, %v1413_v6 }
 0x2b6   :  { %v1434_v59 = vand.u32 2147483647, %v1432_v46  ;;  %v1433_v26 = vmax.f32 %v1432_v46, 0.0 }
 0x2b8   :  { %v1435_v16 = vsub.f32 0.0, %v1434_v59 }
 0x2ba   :  { %v1436_v49 = vmul.f32 1.442695, %v1435_v16 }
 0x2bc   :  { %2552 = vpow2.f32 %v1436_v49 }
 0x2c6   :  { %v2553_v25 = vpop.eup %2552 }
 0x2c7   :  { %v1438_v10 = vadd.f32 1.0, %v2553_v25 }
 0x2c9   :  { %2554 = vlog2.f32 %v1438_v10 }
 0x2d3   :  { %v2555_v1 = vpop.eup %2554 }
 0x2d4   :  { %v1440_v27 = vmul.f32 0.6931472, %v2555_v1 }
 0x2d6   :  { %v1441_v60 = vadd.f32 %v1440_v27, %v1433_v26 }
 0x2d8   :  { %v1442_v53 = vadd.f32 1e-08, %v1441_v60 }
 0x2da   :  { %2556 = vrsqrt.f32 %v1442_v53  ;;  %vm1445_vm14 = vcmp.eq.f32.partialorder %v1442_v53, inf  ;;  %v1448_v23 = vand.u32 2147483648, %v1442_v53  ;;  %vm1447_vm15 = vcmp.eq.f32.partialorder %v1442_v53, 0.0 }
 0x2e4   :  { %v2557_v19 = vpop.eup %2556 }
 0x2e5   :  { %v1444_v9 = vmul.f32 %v2557_v19, %v1442_v53 }
 0x2e7   :  { %v1446_v50 = vsel %vm1445_vm14, %v1442_v53, %v1444_v9 }
 0x2e8   :  { %v1449_v2 = vsel %vm1447_vm15, %v1448_v23, %v1446_v50 }
 0x2e9   :  { %v1455_v51 = vmul.f32 %v3399_v48, %v1449_v2 }
 0x2eb   :  { %1457 = vrot.lane.b32.xlu0 %v1455_v51, %s2663_s21 }
 0x2ef   :  { %1694 = vrot.lane.b32.xlu0 %v1689_v12, %s2663_s21 }
 0x318   :  { %v2395_v11 = vpop.f32.mrb[10].mxu0 }
 0x319   :  { %v1876_v30 = vpop.f32.mrb[11].mxu0 }
 0x31c   :  { %v2398_v21 = vpop.f32.mrb[12].mxu0 }
 0x31d   :  { %v1886_v5 = vpop.f32.mrb[13].mxu0 }
 0x35d   :  { %v1458_v48 = vpop.permute.xlu0 %1457 }
 0x35e   :  { %v1460_v42 = vadd.f32 %v1458_v48, %v1422_v56 }
 0x360   :  { %v1701_v41 = vmul.f32 %v1700_v7, %v1460_v42  ;;  %1461 = vst.msk [vmem:[#allocation2] sm:$0xff] %vm1279_vm11, %v1460_v42 }
 0x361   :  { %v1695_v57 = vpop.permute.xlu0 %1694 }
 0x362   :  { %1699 = vst.msk [vmem:[%s3607_s13 + $0x28] sm:$0xff] %vm1279_vm11, %v1695_v57  ;;  %2381 = vmatpush3.xpose.msk.msra.mxu1 %vm1279_vm11, %v1701_v41 }
 0x365   :  { %2383 = vmatmul.mubr.msk.f32.vlgmr.msra.gmra.mrb[12].mxu1 %vm1279_vm11, %v2664_v35 }
 0x369   :  { %v1783_v29 = vld [vmem:[%s3607_s13 + $0x28] sm:$0xff] }
 0x36a   :  { %2400 = vmatmul.mubr.msk.f32.gmra.mrb[14].mxu0 %vm1279_vm11, %v1783_v29 }
 0x438   :  { %v1774_v4 = vpop.f32.mrb[12].mxu1 }
 0x439   :  { %v1791_v8 = vrot.slane %v1774_v4, %v2849_v37  ;;  %v2384_v36 = vpop.f32.mrb[13].mxu1 }
 0x43b   :  { %v1877_v58 = vadd.f32 %v1876_v30, %v1791_v8  ;;  %v1882_v52 = vadd.f32 %v2395_v11, %v1791_v8  ;;  %v1887_v47 = vadd.f32 %v1886_v5, %v1791_v8  ;;  %v1892_v20 = vadd.f32 %v2398_v21, %v1791_v8 }
 0x43c   :  { %2645 = shalt.err (!%p2642_p4)
}
 0x43d   :  { %s2646_s18 = scalar_lea.hbm %s3606_s12, 128 }
 0x43e   :  { %p2647_p5 = scmp.ne.s32.totalorder %s3606_s12, %s2646_s18  ;;  %p2650_p6 = scmp.lt.u32.totalorder %s2646_s18, %s3606_s12 }
 0x440   :  { %p2652_p7 = pnand %p2650_p6, %p2647_p5 }
 0x442   :  { %2655 = shalt.err (!%p2652_p7)
}
 0x443   :  { %2144 = dma.vmem_to_hbm [thread:$0]  %s2142_s30, 128, %s3606_s12, [#allocation3]   ;;  %v2401_v37 = vpop.f32.mrb[14].mxu0  ;;  %v1912_v15 = vadd.f32 %v2246_v18, %v1877_v58  ;;  %v1913_v45 = vadd.f32 %v2246_v18, %v1882_v52  ;;  %v1914_v13 = vadd.f32 %v2246_v18, %v1887_v47  ;;  %v3504_v32 = vadd.f32 %v2246_v18, %v1892_v20 }
 0x444   :  { %v1902_v39 = vadd.f32 %v2401_v37, %v1791_v8  ;;  %v1896_v38 = vpop.f32.mrb[15].mxu0  ;;  %vm2062_vm0 = vcmask 64512  }
 0x445   :  { %v1930_v62 = vand.u32 2147483647, %v1912_v15  ;;  %v1931_v44 = vand.u32 2147483647, %v1913_v45  ;;  %v1932_v22 = vand.u32 2147483647, %v1914_v13  ;;  %v1897_v54 = vadd.f32 %v1896_v38, %v1791_v8 }
 0x446   :  { %v3506_v31 = vadd.f32 %v2246_v18, %v1902_v39  ;;  %v1933_v14 = vand.u32 2147483647, %v3504_v32  ;;  %v1918_v2 = vsub.f32 0.0, %v1912_v15  ;;  %v1919_v51 = vsub.f32 0.0, %v1913_v45 }
 0x447   :  { %v1936_v34 = vsub.f32 0.0, %v1930_v62  ;;  %v1937_v61 = vsub.f32 0.0, %v1931_v44  ;;  %v1938_v28 = vsub.f32 0.0, %v1932_v22  ;;  %v3510_v46 = vadd.f32 %v2246_v18, %v1897_v54 }
 0x448   :  { %v1935_v55 = vand.u32 2147483647, %v3506_v31  ;;  %v1939_v43 = vsub.f32 0.0, %v1933_v14  ;;  %v1920_v12 = vsub.f32 0.0, %v1914_v13  ;;  %v1921_v30 = vsub.f32 0.0, %v3504_v32 }
 0x449   :  { %v1942_v3 = vmul.f32 1.442695, %v1936_v34  ;;  %v1944_v0 = vmul.f32 1.442695, %v1937_v61  ;;  %v1946_v6 = vmul.f32 1.442695, %v1938_v28 }
 0x44a   :  { %v1941_v24 = vsub.f32 0.0, %v1935_v55  ;;  %v1948_v63 = vmul.f32 1.442695, %v1939_v43  ;;  %v1934_v59 = vand.u32 2147483647, %v3510_v46  ;;  %v1923_v5 = vsub.f32 0.0, %v3506_v31 }
 0x44b   :  { %2558 = vpow2.f32 %v1942_v3  ;;  %v1924_v33 = vmax.f32 %v1918_v2, 0.0  ;;  %v1925_v48 = vmax.f32 %v1919_v51, 0.0  ;;  %v1926_v57 = vmax.f32 %v1920_v12, 0.0 }
 0x44c   :  { %v1952_v40 = vmul.f32 1.442695, %v1941_v24  ;;  %2560 = vpow2.f32 %v1944_v0  ;;  %v1940_v16 = vsub.f32 0.0, %v1934_v59  ;;  %v1927_v8 = vmax.f32 %v1921_v30, 0.0 }
 0x44d   :  { %2562 = vpow2.f32 %v1946_v6  ;;  %v1922_v58 = vsub.f32 0.0, %v3510_v46  ;;  %v1929_v52 = vmax.f32 %v1923_v5, 0.0 }
 0x44e   :  { %2564 = vpow2.f32 %v1948_v63  ;;  %v1950_v49 = vmul.f32 1.442695, %v1940_v16 }
 0x44f   :  { %2566 = vpow2.f32 %v1952_v40  ;;  %v1928_v44 = vmax.f32 %v1922_v58, 0.0 }
 0x450   :  { %2568 = vpow2.f32 %v1950_v49 }
 0x455   :  { %v2559_v17 = vpop.eup %2558 }
 0x456   :  { %v2561_v25 = vpop.eup %2560  ;;  %v1954_v10 = vadd.f32 1.0, %v2559_v17 }
 0x457   :  { %v2563_v1 = vpop.eup %2562  ;;  %v1955_v26 = vadd.f32 1.0, %v2561_v25 }
 0x458   :  { %v2565_v27 = vpop.eup %2564  ;;  %v1956_v60 = vadd.f32 1.0, %v2563_v1  ;;  %2570 = vlog2.f32 %v1954_v10 }
 0x459   :  { %v2567_v53 = vpop.eup %2566  ;;  %v1957_v19 = vadd.f32 1.0, %v2565_v27  ;;  %2572 = vlog2.f32 %v1955_v26 }
 0x45a   :  { %v1959_v9 = vadd.f32 1.0, %v2567_v53  ;;  %2574 = vlog2.f32 %v1956_v60  ;;  %v2569_v23 = vpop.eup %2568 }
 0x45b   :  { %2576 = vlog2.f32 %v1957_v19  ;;  %v1958_v50 = vadd.f32 1.0, %v2569_v23 }
 0x45c   :  { %2578 = vlog2.f32 %v1959_v9 }
 0x45d   :  { %2580 = vlog2.f32 %v1958_v50 }
 0x462   :  { %v2571_v11 = vpop.eup %2570 }
 0x463   :  { %v2573_v21 = vpop.eup %2572  ;;  %v1961_v56 = vmul.f32 0.6931472, %v2571_v11 }
 0x464   :  { %v2575_v7 = vpop.eup %2574  ;;  %v1963_v42 = vmul.f32 0.6931472, %v2573_v21 }
 0x465   :  { %v2577_v41 = vpop.eup %2576  ;;  %v1965_v35 = vmul.f32 0.6931472, %v2575_v7  ;;  %v1972_v29 = vadd.f32 %v1961_v56, %v1924_v33 }
 0x466   :  { %v2579_v4 = vpop.eup %2578  ;;  %v1967_v36 = vmul.f32 0.6931472, %v2577_v41  ;;  %v1973_v18 = vadd.f32 %v1963_v42, %v1925_v48 }
 0x467   :  { %v1971_v47 = vmul.f32 0.6931472, %v2579_v4  ;;  %v1974_v20 = vadd.f32 %v1965_v35, %v1926_v57  ;;  %v1978_v37 = vsub.f32 0.0, %v1972_v29  ;;  %v2581_v13 = vpop.eup %2580 }
 0x468   :  { %v1975_v15 = vadd.f32 %v1967_v36, %v1927_v8  ;;  %v1979_v45 = vsub.f32 0.0, %v1973_v18  ;;  %v1969_v22 = vmul.f32 0.6931472, %v2581_v13 }
 0x469   :  { %v1977_v39 = vadd.f32 %v1971_v47, %v1929_v52  ;;  %v1980_v32 = vsub.f32 0.0, %v1974_v20  ;;  %v1984_v38 = vmul.f32 1.442695, %v1978_v37 }
 0x46a   :  { %v1981_v31 = vsub.f32 0.0, %v1975_v15  ;;  %v1986_v62 = vmul.f32 1.442695, %v1979_v45  ;;  %v1976_v61 = vadd.f32 %v1969_v22, %v1928_v44 }
 0x46b   :  { %v1983_v14 = vsub.f32 0.0, %v1977_v39  ;;  %2582 = vpow2.f32 %v1984_v38  ;;  %v1988_v55 = vmul.f32 1.442695, %v1980_v32 }
 0x46c   :  { %2584 = vpow2.f32 %v1986_v62  ;;  %v1990_v34 = vmul.f32 1.442695, %v1981_v31  ;;  %v1982_v54 = vsub.f32 0.0, %v1976_v61 }
 0x46d   :  { %2586 = vpow2.f32 %v1988_v55  ;;  %v1994_v28 = vmul.f32 1.442695, %v1983_v14 }
 0x46e   :  { %2588 = vpow2.f32 %v1990_v34  ;;  %v1992_v43 = vmul.f32 1.442695, %v1982_v54 }
 0x46f   :  { %2590 = vpow2.f32 %v1994_v28 }
 0x470   :  { %2592 = vpow2.f32 %v1992_v43 }
 0x475   :  { %v3516_v24 = vpop.eup %2582 }
 0x476   :  { %v3518_v3 = vpop.eup %2584  ;;  %2063 = vst.msk [vmem:[%s3608_s14] sm:$0xff] %vm2062_vm0, %v3516_v24  ;;  %v1996_v0 = vadd.f32 1e-05, %v3516_v24  ;;  %v2020_v16 = vsub.f32 1.0, %v3516_v24 }
 0x477   :  { %v3526_v6 = vpop.eup %2586  ;;  %v1997_v46 = vadd.f32 1e-05, %v3518_v3  ;;  %v2021_v63 = vsub.f32 1.0, %v3518_v3  ;;  %2064 = vst.msk [vmem:[%s3608_s14 + $0x8] sm:$0xff] %vm2062_vm0, %v3518_v3 }
 0x478   :  { %v3535_v40 = vpop.eup %2588  ;;  %2065 = vst.msk [vmem:[%s3608_s14 + $0x10] sm:$0xff] %vm2062_vm0, %v3526_v6  ;;  %v1998_v59 = vadd.f32 1e-05, %v3526_v6  ;;  %2594 = vlog2.f32 %v1996_v0  ;;  %v2022_v27 = vsub.f32 1.0, %v3526_v6  ;;  %v2026_v50 = vadd.f32 1e-05, %v2020_v16 }
 0x479   :  { %v3544_v49 = vpop.eup %2590  ;;  %v1999_v17 = vadd.f32 1e-05, %v3535_v40  ;;  %2596 = vlog2.f32 %v1997_v46  ;;  %v2023_v25 = vsub.f32 1.0, %v3535_v40  ;;  %v2027_v10 = vadd.f32 1e-05, %v2021_v63  ;;  %2066 = vst.msk [vmem:[%s3608_s14 + $0x18] sm:$0xff] %vm2062_vm0, %v3535_v40 }
 0x47a   :  { %v2001_v1 = vadd.f32 1e-05, %v3544_v49  ;;  %v2025_v26 = vsub.f32 1.0, %v3544_v49  ;;  %2068 = vst.msk [vmem:[%s3608_s14 + $0x28] sm:$0xff] %vm2062_vm0, %v3544_v49  ;;  %2598 = vlog2.f32 %v1998_v59  ;;  %v3561_v53 = vpop.eup %2592  ;;  %v2028_v2 = vadd.f32 1e-05, %v2022_v27 }
 0x47b   :  { %2600 = vlog2.f32 %v1999_v17  ;;  %v2029_v60 = vadd.f32 1e-05, %v2023_v25  ;;  %v2000_v9 = vadd.f32 1e-05, %v3561_v53  ;;  %v2024_v23 = vsub.f32 1.0, %v3561_v53  ;;  %2067 = vst.msk [vmem:[%s3608_s14 + $0x20] sm:$0xff] %vm2062_vm0, %v3561_v53 }
 0x47c   :  { %2602 = vlog2.f32 %v2001_v1  ;;  %v2031_v19 = vadd.f32 1e-05, %v2025_v26 }
 0x47d   :  { %2604 = vlog2.f32 %v2027_v10  ;;  %v2030_v51 = vadd.f32 1e-05, %v2024_v23 }
 0x47e   :  { %2606 = vlog2.f32 %v2029_v60 }
 0x47f   :  { %2608 = vlog2.f32 %v2031_v19 }
 0x480   :  { %2610 = vlog2.f32 %v2000_v9 }
 0x481   :  { %2612 = vlog2.f32 %v2026_v50 }
 0x482   :  { %v2595_v12 = vpop.eup %2594  ;;  %2614 = vlog2.f32 %v2028_v2 }
 0x483   :  { %v2597_v11 = vpop.eup %2596  ;;  %2616 = vlog2.f32 %v2030_v51  ;;  %v2003_v18 = vmul.f32 0.6931472, %v2595_v12 }
 0x484   :  { %v2599_v30 = vpop.eup %2598  ;;  %v2005_v33 = vmul.f32 0.6931472, %v2597_v11 }
 0x485   :  { %v2601_v21 = vpop.eup %2600  ;;  %v2007_v37 = vmul.f32 0.6931472, %v2599_v30  ;;  %v2014_v61 = vmul.f32 %v3516_v24, %v2003_v18 }
 0x486   :  { %v2603_v5 = vpop.eup %2602  ;;  %v2009_v7 = vmul.f32 0.6931472, %v2601_v21  ;;  %v2015_v4 = vmul.f32 %v3518_v3, %v2005_v33 }
 0x487   :  { %v2605_v56 = vpop.eup %2604  ;;  %v2013_v48 = vmul.f32 0.6931472, %v2603_v5  ;;  %v2016_v28 = vmul.f32 %v3526_v6, %v2007_v37 }
 0x488   :  { %v2607_v42 = vpop.eup %2606  ;;  %v2035_v41 = vmul.f32 0.6931472, %v2605_v56  ;;  %v2017_v52 = vmul.f32 %v3535_v40, %v2009_v7 }
 0x489   :  { %v2609_v57 = vpop.eup %2608  ;;  %v2039_v35 = vmul.f32 0.6931472, %v2607_v42  ;;  %v2019_v47 = vmul.f32 %v3544_v49, %v2013_v48 }
 0x48a   :  { %v2611_v29 = vpop.eup %2610  ;;  %v2043_v8 = vmul.f32 0.6931472, %v2609_v57  ;;  %v2045_v36 = vmul.f32 %v2035_v41, %v2021_v63 }
 0x48b   :  { %v2613_v58 = vpop.eup %2612  ;;  %v2047_v20 = vmul.f32 %v2039_v35, %v2023_v25  ;;  %v2011_v39 = vmul.f32 0.6931472, %v2611_v29 }
 0x48c   :  { %v2615_v15 = vpop.eup %2614  ;;  %v2049_v45 = vmul.f32 %v2043_v8, %v2025_v26  ;;  %v2051_v13 = vadd.f32 %v2045_v36, %v2015_v4  ;;  %v2033_v32 = vmul.f32 0.6931472, %v2613_v58 }
 0x48d   :  { %v2617_v38 = vpop.eup %2616  ;;  %v2053_v31 = vadd.f32 %v2047_v20, %v2017_v52  ;;  %v2037_v62 = vmul.f32 0.6931472, %v2615_v15  ;;  %v2018_v46 = vmul.f32 %v3561_v53, %v2011_v39 }
 0x48e   :  { %v2055_v44 = vadd.f32 %v2049_v45, %v2019_v47  ;;  %v2057_v22 = vsub.f32 0.0, %v2051_v13  ;;  %v2041_v14 = vmul.f32 0.6931472, %v2617_v38  ;;  %v2044_v55 = vmul.f32 %v2033_v32, %v2020_v16 }
 0x48f   :  { %v2059_v34 = vsub.f32 0.0, %v2053_v31  ;;  %v2046_v54 = vmul.f32 %v2037_v62, %v2022_v27 }
 0x490   :  { %v2061_v43 = vsub.f32 0.0, %v2055_v44  ;;  %v2072_v0 = vadd.f32 1e-05, %v2057_v22  ;;  %v2048_v63 = vmul.f32 %v2041_v14, %v2024_v23  ;;  %v2050_v17 = vadd.f32 %v2044_v55, %v2014_v61 }
 0x491   :  { %v2082_v59 = vadd.f32 1e-05, %v2059_v34  ;;  %v2052_v25 = vadd.f32 %v2046_v54, %v2016_v28  ;;  %vm2070_vm1 = vcmp.gt.f32.partialorder %v2057_v22, 1e-05  ;;  %vm2080_vm2 = vcmp.gt.f32.partialorder %v2059_v34, 1e-05 }
 0x492   :  { %2618 = vrcp.f32 %v2072_v0  ;;  %v2092_v10 = vadd.f32 1e-05, %v2061_v43  ;;  %v2054_v1 = vadd.f32 %v2048_v63, %v2018_v46  ;;  %v2056_v26 = vsub.f32 0.0, %v2050_v17 }
 0x493   :  { %2620 = vrcp.f32 %v2082_v59  ;;  %v2058_v16 = vsub.f32 0.0, %v2052_v25  ;;  %vm2090_vm3 = vcmp.gt.f32.partialorder %v2061_v43, 1e-05 }
 0x494   :  { %2622 = vrcp.f32 %v2092_v10  ;;  %v2060_v60 = vsub.f32 0.0, %v2054_v1  ;;  %v2071_v19 = vadd.f32 1e-05, %v2056_v26  ;;  %vm2069_vm4 = vcmp.gt.f32.partialorder %v2056_v26, 1e-05 }
 0x495   :  { %v2081_v9 = vadd.f32 1e-05, %v2058_v16  ;;  %vm2079_vm5 = vcmp.gt.f32.partialorder %v2058_v16, 1e-05 }
 0x496   :  { %v2091_v50 = vadd.f32 1e-05, %v2060_v60  ;;  %2624 = vrcp.f32 %v2071_v19  ;;  %vm2089_vm6 = vcmp.gt.f32.partialorder %v2060_v60, 1e-05 }
 0x497   :  { %2626 = vrcp.f32 %v2081_v9 }
 0x498   :  { %2628 = vrcp.f32 %v2091_v50 }
 0x49c   :  { %v2619_v27 = vpop.eup %2618 }
 0x49d   :  { %v2621_v23 = vpop.eup %2620  ;;  %v2078_v2 = vsel %vm2070_vm1, %v2619_v27, 0.0 }
 0x49e   :  { %v2623_v51 = vpop.eup %2622  ;;  %v2088_v12 = vsel %vm2080_vm2, %v2621_v23, 0.0 }
 0x49f   :  { %v2098_v11 = vsel %vm2090_vm3, %v2623_v51, 0.0  ;;  %v2100_v30 = vadd.f32 %v2088_v12, %v2078_v2 }
 0x4a0   :  { %v2625_v21 = vpop.eup %2624 }
 0x4a1   :  { %v2102_v5 = vadd.f32 %v2100_v30, %v2098_v11  ;;  %v2627_v33 = vpop.eup %2626  ;;  %v2077_v56 = vsel %vm2069_vm4, %v2625_v21, 0.0 }
 0x4a2   :  { %v2629_v7 = vpop.eup %2628  ;;  %v2087_v48 = vsel %vm2079_vm5, %v2627_v33, 0.0 }
 0x4a3   :  { %2630 = vrcp.f32 %v2102_v5  ;;  %v2097_v42 = vsel %vm2089_vm6, %v2629_v7, 0.0  ;;  %v2099_v41 = vadd.f32 %v2087_v48, %v2077_v56  ;;  %vm2104_vm7 = vcmp.ne.f32.partialorder %v2102_v5, 0.0 }
 0x4a5   :  { %v2101_v57 = vadd.f32 %v2099_v41, %v2097_v42 }
 0x4a7   :  { %2632 = vrcp.f32 %v2101_v57  ;;  %vm2103_vm8 = vcmp.ne.f32.partialorder %v2101_v57, 0.0 }
 0x4ad   :  { %v2631_v35 = vpop.eup %2630 }
 0x4ae   :  { %v2110_v29 = vsel %vm2104_vm7, %v2631_v35, 0.0 }
 0x4af   :  { %v2112_v4 = vmul.f32 %v2110_v29, %v2078_v2  ;;  %v2118_v8 = vmul.f32 %v2110_v29, %v2088_v12  ;;  %v2124_v36 = vmul.f32 %v2110_v29, %v2098_v11 }
 0x4b1   :  { %v2114_v18 = vmul.f32 %v3518_v3, %v2112_v4  ;;  %v2120_v58 = vmul.f32 %v3535_v40, %v2118_v8  ;;  %v2126_v52 = vmul.f32 %v3544_v49, %v2124_v36  ;;  %v2633_v47 = vpop.eup %2632 }
 0x4b2   :  { %v2109_v37 = vsel %vm2103_vm8, %v2633_v47, 0.0 }
 0x4b3   :  { %v2122_v20 = vadd.f32 %v2120_v58, %v2114_v18  ;;  %v2111_v15 = vmul.f32 %v2109_v37, %v2077_v56  ;;  %v2117_v45 = vmul.f32 %v2109_v37, %v2087_v48  ;;  %v2123_v13 = vmul.f32 %v2109_v37, %v2097_v42 }
 0x4b5   :  { %v2128_v39 = vadd.f32 %v2126_v52, %v2122_v20  ;;  %v2113_v32 = vmul.f32 %v3516_v24, %v2111_v15  ;;  %v2119_v38 = vmul.f32 %v3526_v6, %v2117_v45  ;;  %v2125_v31 = vmul.f32 %v3561_v53, %v2123_v13 }
 0x4b7   :  { %vm2130_vm9 = vcmp.ne.f32.partialorder %v2128_v39, %v2128_v39  ;;  %v2121_v62 = vadd.f32 %v2119_v38, %v2113_v32 }
 0x4b8   :  { %v2132_v3 = vsel %vm2130_vm9, 0.0, %v2128_v39 }
 0x4b9   :  { %2134 = vst.msk [vmem:[%s3608_s14 + $0x38] sm:$0xff] %vm2062_vm0, %v2132_v3  ;;  %v2127_v40 = vadd.f32 %v2125_v31, %v2121_v62 }
 0x4bb   :  { %vm2129_vm10 = vcmp.ne.f32.partialorder %v2127_v40, %v2127_v40 }
 0x4bc   :  { %v2131_v49 = vsel %vm2129_vm10, 0.0, %v2127_v40 }
 0x4bd   :  { %2133 = vst.msk [vmem:[%s3608_s14 + $0x30] sm:$0xff] %vm2062_vm0, %v2131_v49 }
 0x4be   :  { %2656 = dma.done.wait [#allocation3], 128  }
 0x4bf   :  { %2657 = vsyncadd [#allocation3], 4294967168 }
 0x4c0   :  { %2156 = vsyncpa [#allocation3], 1 }

</bundles_post_ra>
